<compile_context>
chip_gen: v6e
topology: v6e:2x2x1
jax: 0.10.0
libtpu: 0.0.40
codegen_flags: <defaults>
</compile_context>

<pallas_src>
import functools

import jax
import jax.numpy as jnp
from jax.experimental import pallas as pl
from jax.experimental.pallas import tpu as pltpu


BN_EPS = 1e-5
FC3_PAD = 128  # lane-padded width of the fc3 output (true width is 12)


def _bn_relu_train(h, gamma, beta):
    """BatchNorm1d (training-mode, biased batch stats) + ReLU, folded to one FMA per element."""
    mu = jnp.mean(h, axis=0, keepdims=True)
    var = jnp.mean(jnp.square(h - mu), axis=0, keepdims=True)
    scale = gamma * jax.lax.rsqrt(var + BN_EPS)       # rsqrt -> EUP slot
    shift = beta - mu * scale
    return jnp.maximum(h * scale + shift, 0.0)


def mlp_kernel(x_ref,
               w1_ref, g1_ref, be1_ref,
               w2_ref, g2_ref, be2_ref,
               w3_ref, b3_ref,
               out_ref):
    # fc1 (bias omitted: cancels under training-mode BN) + bn1 + relu
    x = x_ref[...].astype(jnp.bfloat16)
    h = jnp.dot(x, w1_ref[...], preferred_element_type=jnp.float32)
    h = _bn_relu_train(h, g1_ref[...], be1_ref[...])

    # fc2 (bias omitted) + bn2 + relu
    h = jnp.dot(h.astype(jnp.bfloat16), w2_ref[...], preferred_element_type=jnp.float32)
    h = _bn_relu_train(h, g2_ref[...], be2_ref[...])

    # fc3 (lane-padded to 128 outputs; extra columns of w3/b3 are zero)
    out = jnp.dot(h.astype(jnp.bfloat16), w3_ref[...], preferred_element_type=jnp.float32)
    out_ref[...] = out + b3_ref[...]


def _full_spec(shape):
    nd = len(shape)
    return pl.BlockSpec(shape, lambda i, _nd=nd: (0,) * _nd)


def position_transform_mlp(x, params):
    """Runs fc1/bn1/relu/fc2/bn2/relu/fc3 in one Pallas kernel. Returns [B, 12]."""
    (w1, g1, be1, w2, g2, be2, w3p, b3p) = params
    B = x.shape[0]
    args = (x, w1, g1, be1, w2, g2, be2, w3p, b3p)

    out_padded = pl.pallas_call(
        mlp_kernel,
        out_shape=jax.ShapeDtypeStruct((B, FC3_PAD), jnp.float32),
        grid=(1,),
        in_specs=[_full_spec(a.shape) for a in args],
        out_specs=_full_spec((B, FC3_PAD)),
        compiler_params=pltpu.CompilerParams(
            dimension_semantics=("arbitrary",),
            vmem_limit_bytes=32 * 1024 * 1024),
    )(*args)
    return out_padded[:, :12]


def symmetric_orthogonalization(x):
    """Plain-JAX port of position_transform.symmetric_orthogonalization.

    x: [B, 12] -> [B, 3, 4] = [rot | trans]
    """
    # TODO(synk): no Pallas TPU SVD/det primitive; batched 3x3 SVD stays in plain JAX. A
    # Newton-Schulz polar decomposition would be faster but does not reproduce the det-sign fix
    # (closest *rotation*) for det(m) < 0 inputs, so the reference SVD path is kept.
    t_part = x[:, 9:].reshape(-1, 3, 1)
    m = x[:, :9].reshape(-1, 3, 3)
    u, s, vt = jnp.linalg.svd(m, full_matrices=False)  # vt == torch's v.transpose(1, 2)
    det = jnp.linalg.det(jnp.matmul(u, vt)).reshape(-1, 1, 1)
    vt = jnp.concatenate([vt[:, :2, :], vt[:, -1:, :] * det], axis=1)
    r = jnp.matmul(u, vt)
    return jnp.concatenate([r, t_part], axis=-1)


def position_transform_forward(x, params):
    y = position_transform_mlp(x, params)          # [B, 12]
    return symmetric_orthogonalization(y)          # [B, 3, 4]


def init_params(key, in_shape):
    """Deterministic params mimicking nn.Linear defaults; BN gamma=1, beta=0.

    Notes:
      * fc1/fc2 biases are not materialized: they cancel exactly under training-mode BatchNorm.
      * Weights are stored bf16 (f32 accumulation in the kernel); BN/beta/gamma/b3 stay f32.
      * fc3 weight/bias are zero-padded from 12 to FC3_PAD output columns for a lane-dense store.
    """
    def linear_w(key, fan_in, fan_out):
        k_w, _ = jax.random.split(key)
        bound = 1.0 / jnp.sqrt(jnp.float32(fan_in))
        return jax.random.uniform(k_w, (fan_in, fan_out), jnp.float32, -bound, bound)

    def linear_b(key, fan_in, fan_out):
        _, k_b = jax.random.split(key)
        bound = 1.0 / jnp.sqrt(jnp.float32(fan_in))
        return jax.random.uniform(k_b, (1, fan_out), jnp.float32, -bound, bound)

    k1, k2, k3 = jax.random.split(key, 3)
    w1 = linear_w(k1, in_shape, 512).astype(jnp.bfloat16)
    w2 = linear_w(k2, 512, 256).astype(jnp.bfloat16)
    w3 = linear_w(k3, 256, 12)            # is_6d=False -> 12 outputs (9 rot + 3 trans)
    b3 = linear_b(k3, 256, 12)

    # Lane-pad fc3 to 128 output columns (zeros beyond column 12).
    w3p = jnp.zeros((256, FC3_PAD), jnp.float32).at[:, :12].set(w3).astype(jnp.bfloat16)
    b3p = jnp.zeros((1, FC3_PAD), jnp.float32).at[:, :12].set(b3)

    g1 = jnp.ones((1, 512), jnp.float32)
    be1 = jnp.zeros((1, 512), jnp.float32)
    g2 = jnp.ones((1, 256), jnp.float32)
    be2 = jnp.zeros((1, 256), jnp.float32)
    return (w1, g1, be1, w2, g2, be2, w3p, b3p)


if __name__ == "__main__":
    B = 8
    IN_SHAPE = 64

    key = jax.random.PRNGKey(0)
    k_x, k_p = jax.random.split(key)
    x = jax.random.normal(k_x, (B, IN_SHAPE), jnp.float32)
    params = init_params(k_p, IN_SHAPE)

    fwd = jax.jit(functools.partial(position_transform_forward, params=params))
    out = fwd(x)
    jax.block_until_ready(out)

    assert out.shape == (B, 3, 4), out.shape
    assert out.dtype == jnp.float32
    assert bool(jnp.all(jnp.isfinite(out)))
    print("KERNEL_OK")
</pallas_src>

<mosaic_0001>
module attributes {stable_mosaic.version = 11 : i64} {
  func.func @mlp_kernel(%arg0: i32, %arg1: memref<8x64xf32, #tpu.memory_space<vmem>>, %arg2: memref<64x512xbf16, #tpu.memory_space<vmem>>, %arg3: memref<1x512xf32, #tpu.memory_space<vmem>>, %arg4: memref<1x512xf32, #tpu.memory_space<vmem>>, %arg5: memref<512x256xbf16, #tpu.memory_space<vmem>>, %arg6: memref<1x256xf32, #tpu.memory_space<vmem>>, %arg7: memref<1x256xf32, #tpu.memory_space<vmem>>, %arg8: memref<256x128xbf16, #tpu.memory_space<vmem>>, %arg9: memref<1x128xf32, #tpu.memory_space<vmem>>, %arg10: memref<8x128xf32, #tpu.memory_space<vmem>>) attributes {dimension_semantics = [#tpu.dimension_semantics<arbitrary>], iteration_bounds = array<i64: 1>, scalar_prefetch = 0 : i64, scratch_operands = 0 : i64, tpu.core_type = #tpu.core_type<tc>, window_params = [{pipeline_mode = #tpu.pipeline_mode<synchronous>, transform_indices = @transform_0, window_bounds = array<i64: 8, 64>}, {pipeline_mode = #tpu.pipeline_mode<synchronous>, transform_indices = @transform_1, window_bounds = array<i64: 64, 512>}, {pipeline_mode = #tpu.pipeline_mode<synchronous>, transform_indices = @transform_2, window_bounds = array<i64: 1, 512>}, {pipeline_mode = #tpu.pipeline_mode<synchronous>, transform_indices = @transform_3, window_bounds = array<i64: 1, 512>}, {pipeline_mode = #tpu.pipeline_mode<synchronous>, transform_indices = @transform_4, window_bounds = array<i64: 512, 256>}, {pipeline_mode = #tpu.pipeline_mode<synchronous>, transform_indices = @transform_5, window_bounds = array<i64: 1, 256>}, {pipeline_mode = #tpu.pipeline_mode<synchronous>, transform_indices = @transform_6, window_bounds = array<i64: 1, 256>}, {pipeline_mode = #tpu.pipeline_mode<synchronous>, transform_indices = @transform_7, window_bounds = array<i64: 256, 128>}, {pipeline_mode = #tpu.pipeline_mode<synchronous>, transform_indices = @transform_8, window_bounds = array<i64: 1, 128>}, {pipeline_mode = #tpu.pipeline_mode<synchronous>, transform_indices = @transform_9, window_bounds = array<i64: 8, 128>}]} {
    %c0 = arith.constant 0 : index
    %c0_0 = arith.constant 0 : index
    %0 = vector.load %arg1[%c0, %c0_0] : memref<8x64xf32, #tpu.memory_space<vmem>>, vector<8x64xf32>
    %1 = arith.truncf %0 : vector<8x64xf32> to vector<8x64xbf16>
    %c0_1 = arith.constant 0 : index
    %c0_2 = arith.constant 0 : index
    %2 = vector.load %arg2[%c0_1, %c0_2] : memref<64x512xbf16, #tpu.memory_space<vmem>>, vector<64x512xbf16>
    %cst = arith.constant dense<0.000000e+00> : vector<8x512xf32>
    %3 = tpu.matmul %1, %2, %cst {dimension_numbers = #tpu.dot_dimension_numbers<[1], [0], [0], [1], [0, 0, 1, 1], [], []>} : vector<8x64xbf16>, vector<64x512xbf16>, vector<8x512xf32> -> vector<8x512xf32>
    %c0_3 = arith.constant 0 : index
    %c0_4 = arith.constant 0 : index
    %4 = vector.load %arg3[%c0_3, %c0_4] : memref<1x512xf32, #tpu.memory_space<vmem>>, vector<1x512xf32>
    %c0_5 = arith.constant 0 : index
    %c0_6 = arith.constant 0 : index
    %5 = vector.load %arg4[%c0_5, %c0_6] : memref<1x512xf32, #tpu.memory_space<vmem>>, vector<1x512xf32>
    %cst_7 = arith.constant dense<0.000000e+00> : vector<512xf32>
    %6 = vector.multi_reduction <add>, %3, %cst_7 [0] : vector<8x512xf32> to vector<512xf32>
    %7 = vector.shape_cast %6 : vector<512xf32> to vector<1x512xf32>
    %cst_8 = arith.constant 8.000000e+00 : f32
    %8 = vector.broadcast %cst_8 : f32 to vector<1x512xf32>
    %9 = arith.divf %7, %8 : vector<1x512xf32>
    %10 = vector.broadcast %9 : vector<1x512xf32> to vector<8x512xf32>
    %11 = arith.subf %3, %10 : vector<8x512xf32>
    %12 = arith.mulf %11, %11 : vector<8x512xf32>
    %cst_9 = arith.constant dense<0.000000e+00> : vector<512xf32>
    %13 = vector.multi_reduction <add>, %12, %cst_9 [0] : vector<8x512xf32> to vector<512xf32>
    %14 = vector.shape_cast %13 : vector<512xf32> to vector<1x512xf32>
    %cst_10 = arith.constant 8.000000e+00 : f32
    %15 = vector.broadcast %cst_10 : f32 to vector<1x512xf32>
    %16 = arith.divf %14, %15 : vector<1x512xf32>
    %cst_11 = arith.constant 9.99999974E-6 : f32
    %17 = vector.broadcast %cst_11 : f32 to vector<1x512xf32>
    %18 = arith.addf %16, %17 : vector<1x512xf32>
    %19 = math.rsqrt %18 : vector<1x512xf32>
    %20 = arith.mulf %4, %19 : vector<1x512xf32>
    %21 = arith.mulf %9, %20 : vector<1x512xf32>
    %22 = arith.subf %5, %21 : vector<1x512xf32>
    %23 = vector.broadcast %20 : vector<1x512xf32> to vector<8x512xf32>
    %24 = arith.mulf %3, %23 : vector<8x512xf32>
    %25 = vector.broadcast %22 : vector<1x512xf32> to vector<8x512xf32>
    %26 = arith.addf %24, %25 : vector<8x512xf32>
    %cst_12 = arith.constant 0.000000e+00 : f32
    %27 = vector.broadcast %cst_12 : f32 to vector<8x512xf32>
    %28 = arith.maximumf %26, %27 : vector<8x512xf32>
    %29 = arith.truncf %28 : vector<8x512xf32> to vector<8x512xbf16>
    %c0_13 = arith.constant 0 : index
    %c0_14 = arith.constant 0 : index
    %30 = vector.load %arg5[%c0_13, %c0_14] : memref<512x256xbf16, #tpu.memory_space<vmem>>, vector<512x256xbf16>
    %cst_15 = arith.constant dense<0.000000e+00> : vector<8x256xf32>
    %31 = tpu.matmul %29, %30, %cst_15 {dimension_numbers = #tpu.dot_dimension_numbers<[1], [0], [0], [1], [0, 0, 1, 1], [], []>} : vector<8x512xbf16>, vector<512x256xbf16>, vector<8x256xf32> -> vector<8x256xf32>
    %c0_16 = arith.constant 0 : index
    %c0_17 = arith.constant 0 : index
    %32 = vector.load %arg6[%c0_16, %c0_17] : memref<1x256xf32, #tpu.memory_space<vmem>>, vector<1x256xf32>
    %c0_18 = arith.constant 0 : index
    %c0_19 = arith.constant 0 : index
    %33 = vector.load %arg7[%c0_18, %c0_19] : memref<1x256xf32, #tpu.memory_space<vmem>>, vector<1x256xf32>
    %cst_20 = arith.constant dense<0.000000e+00> : vector<256xf32>
    %34 = vector.multi_reduction <add>, %31, %cst_20 [0] : vector<8x256xf32> to vector<256xf32>
    %35 = vector.shape_cast %34 : vector<256xf32> to vector<1x256xf32>
    %cst_21 = arith.constant 8.000000e+00 : f32
    %36 = vector.broadcast %cst_21 : f32 to vector<1x256xf32>
    %37 = arith.divf %35, %36 : vector<1x256xf32>
    %38 = vector.broadcast %37 : vector<1x256xf32> to vector<8x256xf32>
    %39 = arith.subf %31, %38 : vector<8x256xf32>
    %40 = arith.mulf %39, %39 : vector<8x256xf32>
    %cst_22 = arith.constant dense<0.000000e+00> : vector<256xf32>
    %41 = vector.multi_reduction <add>, %40, %cst_22 [0] : vector<8x256xf32> to vector<256xf32>
    %42 = vector.shape_cast %41 : vector<256xf32> to vector<1x256xf32>
    %cst_23 = arith.constant 8.000000e+00 : f32
    %43 = vector.broadcast %cst_23 : f32 to vector<1x256xf32>
    %44 = arith.divf %42, %43 : vector<1x256xf32>
    %cst_24 = arith.constant 9.99999974E-6 : f32
    %45 = vector.broadcast %cst_24 : f32 to vector<1x256xf32>
    %46 = arith.addf %44, %45 : vector<1x256xf32>
    %47 = math.rsqrt %46 : vector<1x256xf32>
    %48 = arith.mulf %32, %47 : vector<1x256xf32>
    %49 = arith.mulf %37, %48 : vector<1x256xf32>
    %50 = arith.subf %33, %49 : vector<1x256xf32>
    %51 = vector.broadcast %48 : vector<1x256xf32> to vector<8x256xf32>
    %52 = arith.mulf %31, %51 : vector<8x256xf32>
    %53 = vector.broadcast %50 : vector<1x256xf32> to vector<8x256xf32>
    %54 = arith.addf %52, %53 : vector<8x256xf32>
    %cst_25 = arith.constant 0.000000e+00 : f32
    %55 = vector.broadcast %cst_25 : f32 to vector<8x256xf32>
    %56 = arith.maximumf %54, %55 : vector<8x256xf32>
    %57 = arith.truncf %56 : vector<8x256xf32> to vector<8x256xbf16>
    %c0_26 = arith.constant 0 : index
    %c0_27 = arith.constant 0 : index
    %58 = vector.load %arg8[%c0_26, %c0_27] : memref<256x128xbf16, #tpu.memory_space<vmem>>, vector<256x128xbf16>
    %cst_28 = arith.constant dense<0.000000e+00> : vector<8x128xf32>
    %59 = tpu.matmul %57, %58, %cst_28 {dimension_numbers = #tpu.dot_dimension_numbers<[1], [0], [0], [1], [0, 0, 1, 1], [], []>} : vector<8x256xbf16>, vector<256x128xbf16>, vector<8x128xf32> -> vector<8x128xf32>
    %c0_29 = arith.constant 0 : index
    %c0_30 = arith.constant 0 : index
    %60 = vector.load %arg9[%c0_29, %c0_30] : memref<1x128xf32, #tpu.memory_space<vmem>>, vector<1x128xf32>
    %61 = vector.broadcast %60 : vector<1x128xf32> to vector<8x128xf32>
    %62 = arith.addf %59, %61 : vector<8x128xf32>
    %c0_31 = arith.constant 0 : index
    %c0_32 = arith.constant 0 : index
    %63 = vector.load %arg10[%c0_31, %c0_32] : memref<8x128xf32, #tpu.memory_space<vmem>>, vector<8x128xf32>
    tpu.vector_store %arg10[%c0_31, %c0_32], %62 {strides = array<i32>} : memref<8x128xf32, #tpu.memory_space<vmem>>, vector<8x128xf32>,
    return
  }
  func.func @transform_0(%arg0: i32) -> (i32, i32) {
    %c0_i32 = arith.constant 0 : i32
    %c0_i32_0 = arith.constant 0 : i32
    %c0_i32_1 = arith.constant 0 : i32
    return %c0_i32, %c0_i32_0 : i32, i32
  }
  func.func @transform_1(%arg0: i32) -> (i32, i32) {
    %c0_i32 = arith.constant 0 : i32
    %c0_i32_0 = arith.constant 0 : i32
    %c0_i32_1 = arith.constant 0 : i32
    return %c0_i32, %c0_i32_0 : i32, i32
  }
  func.func @transform_2(%arg0: i32) -> (i32, i32) {
    %c0_i32 = arith.constant 0 : i32
    %c0_i32_0 = arith.constant 0 : i32
    %c0_i32_1 = arith.constant 0 : i32
    return %c0_i32, %c0_i32_0 : i32, i32
  }
  func.func @transform_3(%arg0: i32) -> (i32, i32) {
    %c0_i32 = arith.constant 0 : i32
    %c0_i32_0 = arith.constant 0 : i32
    %c0_i32_1 = arith.constant 0 : i32
    return %c0_i32, %c0_i32_0 : i32, i32
  }
  func.func @transform_4(%arg0: i32) -> (i32, i32) {
    %c0_i32 = arith.constant 0 : i32
    %c0_i32_0 = arith.constant 0 : i32
    %c0_i32_1 = arith.constant 0 : i32
    return %c0_i32, %c0_i32_0 : i32, i32
  }
  func.func @transform_5(%arg0: i32) -> (i32, i32) {
    %c0_i32 = arith.constant 0 : i32
    %c0_i32_0 = arith.constant 0 : i32
    %c0_i32_1 = arith.constant 0 : i32
    return %c0_i32, %c0_i32_0 : i32, i32
  }
  func.func @transform_6(%arg0: i32) -> (i32, i32) {
    %c0_i32 = arith.constant 0 : i32
    %c0_i32_0 = arith.constant 0 : i32
    %c0_i32_1 = arith.constant 0 : i32
    return %c0_i32, %c0_i32_0 : i32, i32
  }
  func.func @transform_7(%arg0: i32) -> (i32, i32) {
    %c0_i32 = arith.constant 0 : i32
    %c0_i32_0 = arith.constant 0 : i32
    %c0_i32_1 = arith.constant 0 : i32
    return %c0_i32, %c0_i32_0 : i32, i32
  }
  func.func @transform_8(%arg0: i32) -> (i32, i32) {
    %c0_i32 = arith.constant 0 : i32
    %c0_i32_0 = arith.constant 0 : i32
    %c0_i32_1 = arith.constant 0 : i32
    return %c0_i32, %c0_i32_0 : i32, i32
  }
  func.func @transform_9(%arg0: i32) -> (i32, i32) {
    %c0_i32 = arith.constant 0 : i32
    %c0_i32_0 = arith.constant 0 : i32
    %c0_i32_1 = arith.constant 0 : i32
    return %c0_i32, %c0_i32_0 : i32, i32
  }
}

</mosaic_0001>

<bundles_post_ra>
// kernel: custom-call.57
= control target key start
LH: loop header
LB: loop body
LE: loop exit
PB: predicated region body
PF: predicated region fallthrough
CT: control target
= control target key end

     0   :  { %s643_s9 = smov 0   ;;  %s645_s10 = smov 0   ;;  %s793_s0 = inlined_call_operand.vmem [shape: f32[8,6,3], index: 0, kind: input, shape index: {}]   ;;  %s794_s1 = inlined_call_operand.vmem [shape: f32[8,6,3], index: 1, kind: output, shape index: {0}]   ;;  %s795_s2 = inlined_call_operand.vmem [shape: f32[8,3], index: 2, kind: output, shape index: {1}]  }
   0x1   :  { %s647_s11 = smov 0   ;;  %s649_s12 = smov 0  }
   0x2   :  { %s651_s13 = smov 0  }
   0x3 LB: > { %s28_s14 = sadd.s32 1, %s616_s12  ;;  %s498_s15 = sadd.s32 4294967295, %s620_s13   ;;  %s620_s13 = sphi %s651_s13, %s9_s13   ;;  %s616_s12 = sphi %s649_s12, %s802_s12   ;;  %s612_s11 = sphi %s647_s11, %s801_s11   ;;  %s608_s10 = sphi %s645_s10, %s800_s10   ;;  %s604_s9 = sphi %s643_s9, %s799_s9  }
   0x4   : > { %p30_p0 = scmp.ge.s32.totalorder %s28_s14, 8  ;;  %s33_s16 = ssub.s32 0, %s616_s12 }
   0x5   : > { %s500_s17 = smin.u32 %s616_s12, %s33_s16  ;;  %p57_p1 = scmp.ne.s32.totalorder %s608_s10, %s604_s9 }
   0x6   : > { %s804_s14 = smov (%p30_p0, %s28_s14), 0  ;;  %s35_s18 = sshrl.u32 %s500_s17, 3 }
   0x7   : > { %s39_s19 = ssub.s32 0, %s804_s14  ;;  %p58_p2 = scmp.eq.s32.totalorder %s498_s15, 7 }
   0x8   : > { %s501_s20 = smin.u32 %s39_s19, %s804_s14  ;;  %s47_s24 = sadd.s32 1, %s608_s10 }
   0x9   : > { %s41_s21 = sshrl.u32 %s501_s20, 3  ;;  %p678_p3 = por %p58_p2, %p57_p1 }
   0xa   : > { %s44_s23 = ssub.s32 %s35_s18, %s41_s21  ;;  %p503_p5 = scmp.ge.s32.totalorder %s620_s13, 8 }
   0xb   : > { %p45_p4 = scmp.eq.s32.totalorder %s44_s23, 0  ;;  %s82_s26 = sand.u32 (!%p503_p5), 1, %s620_s13  }
   0xc   : > { %80 = sbr.rel (%p503_p5) target bundleno = 19 (0x13), region = 16  ;;  %s505_s27 = sshll.u32 (!%p503_p5), %s616_s12, 3 }
   0xd   : > { %s684_s25 = scalar_select %p45_p4, %s608_s10, %s47_s24  }
   0xe   : > { %s504_s28 = sshll.u32 (!%p503_p5), %s82_s26, 3  ;;  %s88_s3 = scalar_lea.vmem (!%p503_p5), %s793_s0, %s505_s27 }
   0xf   : > { %s84_s4 = scalar_lea.vmem (!%p503_p5), [#allocation0], %s504_s28 }
  0x11   : > { %v117_v0 = vld [vmem:[%s88_s3] sm:$0xff] }
  0x12   : > { %118 = vst [vmem:[%s84_s4] sm:$0xff] %v117_v0 }
  0x13 PF: > { %p506_p6 = scmp.ge.s32.totalorder %s620_s13, 1  ;;  %p123_p7 = scmp.lt.s32.totalorder %s620_s13, 9 }
  0x15   : > { %p124_p8 = pnand %p506_p6, %p123_p7 }
  0x17   : > { %127 = sbr.rel (%p124_p8) target bundleno = 336 (0x150), region = 54 }
  0x1c   : > { %s130_s5 = sand.u32 1, %s498_s15   ;;  %s144_s6 = sand.u32 1, %s604_s9   ;;  %v626_v2 = vmov 0.0  }
  0x1d   : > { %s507_s7 = sshll.u32 %s130_s5, 3  ;;  %s695_s8 = sshll.u32 %s144_s6, 3 }
  0x1e   : > { %s153_s16 = sand.u32 7, %s612_s11   ;;  %s132_s17 = scalar_lea.vmem [#allocation0], %s507_s7 }
  0x1f   : > { %v155_v1 = vld [vmem:[%s132_s17] sm:$0xff]  ;;  %s146_s18 = scalar_lea.vmem [#allocation2], %s695_s8  ;;  %s703_s20 = scalar_lea.vmem [#allocation1], %s507_s7 }
  0x20   : > { %s701_s19 = scalar_lea.vmem %s146_s18, %s153_s16 [#allocation2]  ;;  %156 = vst [vmem:[%s703_s20] sm:$0xff] %v155_v1  ;;  %s707_s9 = smov 0  }
  0x21   : > { %157 = vst [vmem:[%s701_s19] sm:$0x1] %v626_v2 }
  0x22 LB: >> { %v165_v3 = vlaneseq  ;;  %v716_v5 = vstv %s624_s9  ;;  %s192_s15 = scalar_lea.vmem %s703_s20, %s624_s9 [#allocation1]  ;;  %s250_s21 = scalar_lea.vmem [#allocation3], %s624_s9  ;;  %v627_v59 = vmov 1.0   ;;  %s624_s9 = sphi %s707_s9, %s163_s9  }
  0x23   : >> { %s267_s23 = smov [#allocation3] }
  0x24   : >> { %v713_v4 = vshrl.u32 %v165_v3, 7  ;;  %v244_v48 = vand.u32 127, %v165_v3 }
  0x26   : >> { %vm169_vm0 = vcmp.gt.s32.totalorder %v713_v4, %v716_v5  ;;  %vm170_vm1 = vcmp.lt.s32.totalorder %v713_v4, 6  ;;  %v231_v4 = vmov %v713_v4  ;;  %vm734_vm12 = vcmp.eq.s32.totalorder %v244_v48, %v716_v5 }
  0x27   : >> { %v164_v6 = vld [vmem:[%s703_s20] sm:$0xff]  ;;  %vm171_vm2 = vmand %vm169_vm0, %vm170_vm1  ;;  %v193_v15 = vld [vmem:[%s192_s15] ss:$0 sm:$0xff]  ;;  %s228_s20 = smov %s703_s20  ;;  %vm235_vm9 = vcmp.gt.s32.totalorder %v231_v4, %v716_v5  ;;  %vm236_vm10 = vcmp.lt.s32.totalorder %v231_v4, 6  ;;  %v270_v4 = vmov %v713_v4  ;;  %vm296_vm15 = vcmp.gt.s32.totalorder %v244_v48, %v716_v5 }
  0x28   : >> { %v172_v7 = vsel %vm171_vm2, %v164_v6, 0.0  ;;  %v194_v16 = vand.u32 2147483647, %v193_v15  ;;  %vm219_vm8 = vcmp.lt.f32.partialorder %v193_v15, 0.0  ;;  %v232_v45 = vld [vmem:[%s228_s20] sm:$0xff]  ;;  %vm237_vm11 = vmand %vm235_vm9, %vm236_vm10  ;;  %s266_s20 = smov %s703_s20  ;;  %vm275_vm13 = vcmp.lt.s32.totalorder %v270_v4, 6 }
  0x29   : >> { %v173_v8 = vmul.f32 %v172_v7, %v172_v7  ;;  %v238_v49 = vsel %vm237_vm11, %v232_v45, 0.0  ;;  %v263_v60 = vld [vmem:[%s701_s19] ss:$0 sm:$0xff]  ;;  %v287_v4 = vmov %v713_v4 }
  0x2a   : >> { %v195_v21 = vmax.f32 %v194_v16, 0.0  ;;  %v273_v63 = vld [vmem:[%s266_s20] sm:$0xff]  ;;  %s283_s20 = smov %s266_s20  ;;  %vm304_vm14 = vcmp.ge.s32.totalorder %v287_v4, %v716_v5 }
  0x2b   : >> { %v174_v9 = vrot.slane %v173_v8, 4  ;;  %vm305_vm0 = vmand %vm734_vm12, %vm304_vm14  ;;  %s308_s24 = scalar_lea.vmem %s283_s20, %s624_s9  ;;  %s163_s9 = sadd.s32 1, %s624_s9  }
  0x2c   : >> { %p160_p9 = scmp.ge.s32.totalorder %s163_s9, 3  }
  0x2d   : >> { %v175_v10 = vadd.f32 %v174_v9, %v173_v8  ;;  %s513_s26 = sshll.u32 (%p160_p9), %s612_s11, 3 }
  0x2e   : > { %s327_s29 = scalar_lea.vmem (%p160_p9), %s794_s1, %s513_s26 }
  0x2f   : >> { %v176_v11 = vrot.slane %v175_v10, 2 }
  0x31   : >> { %v177_v12 = vadd.f32 %v176_v11, %v175_v10 }
  0x33   : >> { %v178_v13 = vrot.slane %v177_v12, 1 }
  0x35   : >> { %v179_v14 = vadd.f32 %v178_v13, %v177_v12  ;;  %v294_v13 = vld [vmem:[%s283_s20] sm:$0xff] }
  0x37   : >> { %568 = vrsqrt.f32 %v179_v14  ;;  %vm182_vm3 = vcmp.eq.f32.partialorder %v179_v14, inf  ;;  %v185_v18 = vand.u32 2147483648, %v179_v14  ;;  %vm184_vm4 = vcmp.eq.f32.partialorder %v179_v14, 0.0 }
  0x44   : >> { %v569_v17 = vpop.eup %568 }
  0x45   : >> { %v181_v19 = vmul.f32 %v569_v17, %v179_v14 }
  0x47   : >> { %v183_v20 = vsel %vm182_vm3, %v179_v14, %v181_v19 }
  0x48   : >> { %v186_v22 = vsel %vm184_vm4, %v185_v18, %v183_v20 }
  0x49   : >> { %v196_v23 = vand.u32 2147483647, %v186_v22 }
  0x4b   : >> { %v197_v24 = vmax.f32 %v195_v21, %v196_v23 }
  0x4d   : >> { %570 = vrcp.f32 %v197_v24  ;;  %vm209_vm7 = vcmp.eq.f32.partialorder %v197_v24, 0.0 }
  0x5a   : >> { %v571_v25 = vpop.eup %570 }
  0x5b   : >> { %v199_v26 = vmul.f32 %v571_v25, %v194_v16  ;;  %v202_v27 = vmul.f32 0.0, %v571_v25  ;;  %v206_v28 = vmul.f32 %v571_v25, %v196_v23 }
  0x5d   : >> { %v200_v29 = vmul.f32 %v199_v26, %v199_v26  ;;  %v203_v30 = vmul.f32 %v202_v27, %v202_v27  ;;  %v207_v31 = vmul.f32 %v206_v28, %v206_v28 }
  0x5f   : >> { %v204_v32 = vadd.f32 %v203_v30, %v200_v29 }
  0x61   : >> { %v208_v33 = vadd.f32 %v207_v31, %v204_v32 }
  0x63   : >> { %572 = vrsqrt.f32 %v208_v33  ;;  %vm212_vm5 = vcmp.eq.f32.partialorder %v208_v33, inf  ;;  %v215_v35 = vand.u32 2147483648, %v208_v33  ;;  %vm214_vm6 = vcmp.eq.f32.partialorder %v208_v33, 0.0 }
  0x70   : >> { %v573_v34 = vpop.eup %572 }
  0x71   : >> { %v211_v36 = vmul.f32 %v573_v34, %v208_v33 }
  0x73   : >> { %v213_v37 = vsel %vm212_vm5, %v208_v33, %v211_v36 }
  0x74   : >> { %v216_v38 = vsel %vm214_vm6, %v215_v35, %v213_v37 }
  0x75   : >> { %v217_v39 = vmul.f32 %v216_v38, %v197_v24 }
  0x77   : >> { %v218_v40 = vsel %vm209_vm7, 0.0, %v217_v39 }
  0x78   : >> { %v220_v41 = vxor.u32 2147483648, %v218_v40 }
  0x7a   : >> { %v221_v42 = vsel %vm219_vm8, %v218_v40, %v220_v41 }
  0x7b   : >> { %v726_v43 = vsel %vm184_vm4, %v193_v15, %v221_v42  ;;  %574 = vrcp.f32 %v221_v42  ;;  %v222_v46 = vsub.f32 %v221_v42, %v193_v15 }
  0x7c   : >> { %v227_v44 = vsub.f32 %v193_v15, %v726_v43 }
  0x7e   : >> { %576 = vrcp.f32 %v227_v44 }
  0x88   : >> { %v575_v47 = vpop.eup %574 }
  0x89   : >> { %v224_v50 = vmul.f32 %v575_v47, %v222_v46 }
  0x8b   : >> { %v577_v51 = vpop.eup %576  ;;  %v226_v55 = vsel %vm184_vm4, 0.0, %v224_v50 }
  0x8c   : >> { %v240_v52 = vmul.f32 %v577_v51, %v238_v49  ;;  %v256_v57 = vsel %vm734_vm12, %v226_v55, 0.0 }
  0x8e   : >> { %v241_v54 = vsel %vm184_vm4, 0.0, %v240_v52 }
  0x8f   : >> { %v246_v56 = vsel %vm734_vm12, %v241_v54, 0.0 }
  0x90   : >> { %247 = vadd.xlane.f32.xlu0 %v246_v56 }
  0x94   : >> { %257 = vadd.xlane.f32.xlu0 %v256_v57 }
 0x119   : >> { %v248_v58 = vpop.xlane.xlu0 %247 }
 0x11a   : >> { %249 = vst [vmem:[#allocation3] sm:$0xff] %v248_v58 }
 0x11b   : >> { %251 = vst [vmem:[%s250_s21] sm:$0x1] %v627_v59 }
 0x11d   : >> { %v258_v61 = vpop.xlane.xlu0 %257 }
 0x11e   : >> { %v264_v62 = vsel %vm734_vm12, %v258_v61, %v263_v60 }
 0x11f   : >> { %265 = vst [vmem:[%s701_s19] sm:$0x1] %v264_v62 }
 0x122   : >> { %v272_v0 = vld [vmem:[%s267_s23] sm:$0xff]  ;;  %s284_s23 = smov %s267_s23 }
 0x123   : >> { %v274_v1 = vmul.f32 %v273_v63, %v272_v0  ;;  %v292_v12 = vld [vmem:[%s284_s23] sm:$0xff] }
 0x125   : >> { %v276_v2 = vsel %vm275_vm13, %v274_v1, 0.0 }
 0x126   : >> { %v277_v3 = vrot.slane %v276_v2, 4 }
 0x128   : >> { %v278_v6 = vadd.f32 %v277_v3, %v276_v2 }
 0x12a   : >> { %v279_v7 = vrot.slane %v278_v6, 2 }
 0x12c   : >> { %v280_v8 = vadd.f32 %v279_v7, %v278_v6 }
 0x12e   : >> { %v281_v9 = vrot.slane %v280_v8, 1 }
 0x130   : >> { %v282_v10 = vadd.f32 %v281_v9, %v280_v8 }
 0x132   : >> { %v288_v11 = vmul.f32 %v282_v10, %v258_v61 }
 0x134   : >> { %v293_v14 = vmul.f32 %v292_v12, %v288_v11 }
 0x136   : >> { %v297_v15 = vsub.f32 %v294_v13, %v293_v14 }
 0x138   : >> { %v298_v16 = vsel %vm296_vm15, %v297_v15, %v294_v13 }
 0x139   : >> { %v306_v17 = vsel %vm305_vm0, %v292_v12, %v298_v16 }
 0x13a   : >> { %307 = vst [vmem:[%s283_s20] sm:$0xff] %v306_v17 }
 0x13f   : > { %162 = sbr.rel (!%p160_p9) target bundleno = 34 (0x22), region = 179 }
 0x141   : >> { %v309_v18 = vld [vmem:[%s308_s24] ss:$0 sm:$0xff] }
 0x142   : >> { %v314_v19 = vsel %vm734_vm12, %v726_v43, %v309_v18 }
 0x143   : >> { %315 = vst [vmem:[%s308_s24] sm:$0x1] %v314_v19 }
 0x144   : > { %p364_p10 = scmp.lt.s32.totalorder (%p678_p3), %s612_s11, 0  ;;  %s365_s30 = ssub.s32 (%p678_p3), 0, %s612_s11  ;;  %v400_v5 = vld [vmem:[%s146_s18] sm:$0xff] (%p678_p3) }
 0x145   : > { %s514_s3 = smin.u32 (%p678_p3), %s612_s11, %s365_s30 }
 0x146   : > { %s367_s4 = sshrl.u32 (%p678_p3), %s514_s3, 3 }
 0x147   : > { %363 = sbr.rel (!%p678_p3) target bundleno = 336 (0x150), region = 99  ;;  %s368_s5 = ssub.s32 (%p678_p3), 0, %s367_s4 }
 0x14a   : > { %v356_v4 = vld [vmem:[%s703_s20] sm:$0xff] }
 0x14b   : > { %357 = vst [vmem:[%s327_s29] sm:$0xff] %v356_v4 }
 0x14c   : > { %s806_s5 = smov (!%p364_p10, %s368_s5), %s367_s4 }
 0x14d   : > { %s515_s6 = sshll.u32 %s806_s5, 3 }
 0x14e   : > { %s371_s17 = scalar_lea.vmem %s795_s2, %s515_s6 }
 0x14f   : > { %401 = vst [vmem:[%s371_s17] sm:$0xff] %v400_v5 }
 0x150 PF: > { %s9_s13 = sadd.s32 1, %s620_s13   ;;  %s799_s9 = smov %s608_s10 }
 0x151   : > { %p6_p11 = scmp.ge.s32.totalorder %s9_s13, 10   ;;  %s800_s10 = smov %s684_s25 }
 0x152   : > { %s801_s11 = smov %s616_s12  ;;  %s802_s12 = smov %s804_s14 }
 0x153   :  { %8 = sbr.rel (!%p6_p11) target bundleno = 3 (0x3), region = 190 }

// kernel: custom-call.58
= control target key start
LH: loop header
LB: loop body
LE: loop exit
PB: predicated region body
PF: predicated region fallthrough
CT: control target
= control target key end

     0   :  { %s243_s6 = smov 0   ;;  %s270_s0 = inlined_call_operand.vmem [shape: f32[8,3,3], index: 0, kind: input, shape index: {}]   ;;  %s271_s1 = inlined_call_operand.vmem [shape: f32[8,3,3], index: 1, kind: output, shape index: {}]  }
   0x1 LB: > { %s205_s7 = sadd.s32 4294967295, %s231_s6   ;;  %p207_p0 = scmp.ge.s32.totalorder %s231_s6, 8  ;;  %s231_s6 = sphi %s243_s6, %s7_s6  }
   0x2   : > { %s23_s8 = sand.u32 (!%p207_p0), 1, %s231_s6   ;;  %s209_s9 = sshll.u32 (!%p207_p0), %s231_s6, 2 }
   0x3   : > { %21 = sbr.rel (%p207_p0) target bundleno = 10 (0xa), region = 16  ;;  %s208_s10 = sshll.u32 (!%p207_p0), %s23_s8, 2 }
   0x4   : > { %s27_s13 = scalar_lea.vmem (!%p207_p0), %s270_s0, %s209_s9  ;;  %s25_s14 = scalar_lea.vmem (!%p207_p0), [#allocation1], %s208_s10 }
   0x8   : > { %v44_v0 = vld [vmem:[%s27_s13] sm:$0xf] }
   0x9   : > { %45 = vst [vmem:[%s25_s14] sm:$0xf] %v44_v0 }
   0xa PF: > { %p210_p1 = scmp.ge.s32.totalorder %s231_s6, 1  ;;  %p62_p2 = scmp.lt.s32.totalorder %s231_s6, 9 }
   0xc   : > { %p63_p3 = pnand %p210_p1, %p62_p2 }
   0xd   : > { %s259_s15 = sand.u32 (!%p63_p3), 1, %s205_s7   ;;  %s214_s19 = sshll.u32 (!%p63_p3), %s205_s7, 2 }
   0xe   : > { %66 = sbr.rel (%p63_p3) target bundleno = 329 (0x149), region = 50  ;;  %s211_s16 = sshll.u32 (!%p63_p3), %s259_s15, 2 }
   0xf   : > { %s75_s17 = scalar_lea.vmem (!%p63_p3), [#allocation1], %s211_s16  ;;  %s79_s18 = scalar_lea.vmem (!%p63_p3), [#allocation3], %s211_s16 }
  0x10   : > { %s133_s22 = scalar_lea.vmem (!%p63_p3), %s271_s1, %s214_s19 }
  0x13   : > { %v85_v1 = vlaneseq  ;;  %v83_v2 = vld [vmem:[%s75_s17] sm:$0xf]  ;;  %vm99_vm1 = vcmask 23552  }
  0x14   : > { %84 = vst [vmem:[#allocation0] sm:$0xf] %v83_v2 }
  0x15   : > { %v86_v3 = vand.u32 127, %v85_v1  ;;  %v88_v4 = vshrl.u32 %v85_v1, 7 }
  0x17   : > { %vm94_vm0 = vcmp.eq.s32.totalorder %v86_v3, 0  ;;  %vm90_vm2 = vcmp.eq.s32.totalorder %v86_v3, %v88_v4  ;;  %vm103_vm3 = vcmp.eq.s32.totalorder %v86_v3, 1  ;;  %vm114_vm4 = vcmp.eq.s32.totalorder %v86_v3, 2 }
  0x1b   : > { %v91_v5 = vld [vmem:[#allocation0] sm:$0xff] }
  0x1c   : > { %v98_v6 = vld [vmem:[#allocation0 + $0x1] ss:$0 sm:$0xff]  ;;  %v95_v7 = vsel %vm94_vm0, %v91_v5, 1.0  ;;  %v109_v11 = vld [vmem:[#allocation0 + $0x2] ss:$0 sm:$0xff] }
  0x1d   : > { %v100_v8 = vsel %vm99_vm1, %v98_v6, 0.0  ;;  %v96_v9 = vsel %vm90_vm2, %v95_v7, 0.0  ;;  %v111_v12 = vsel %vm99_vm1, %v109_v11, 0.0 }
  0x1e   : > { %v104_v10 = vmul.f32 %v100_v8, %v96_v9 }
  0x20   : > { %105 = vadd.xlane.f32.xlu0 %v104_v10 }
  0xa9   : > { %v106_v13 = vpop.xlane.xlu0 %105 }
  0xaa   : > { %v107_v14 = vsel %vm103_vm3, %v106_v13, %v96_v9 }
  0xab   : > { %v115_v15 = vmul.f32 %v111_v12, %v107_v14 }
  0xad   : > { %116 = vadd.xlane.f32.xlu0 %v115_v15 }
 0x136   : > { %v117_v16 = vpop.xlane.xlu0 %116 }
 0x137   : > { %v118_v17 = vsel %vm114_vm4, %v117_v16, %v107_v14 }
 0x138   : > { %119 = vst [vmem:[#allocation2] sm:$0xff] %v118_v17 }
 0x13f   : > { %v124_v18 = vld [vmem:[#allocation2] sm:$0xf] }
 0x140   : > { %127 = vst [vmem:[%s79_s18] sm:$0xf] %v124_v18 }
 0x147   : > { %v150_v19 = vld [vmem:[%s79_s18] sm:$0xf] }
 0x148   : > { %151 = vst [vmem:[%s133_s22] sm:$0xf] %v150_v19 }
 0x149 PF: > { %s7_s6 = sadd.s32 1, %s231_s6  }
 0x14a   : > { %p4_p4 = scmp.ge.s32.totalorder %s7_s6, 10  }
 0x14c   :  { %6 = sbr.rel (!%p4_p4) target bundleno = 1 (0x1), region = 112 }

// kernel: custom-call.50
= control target key start
LH: loop header
LB: loop body
LE: loop exit
PB: predicated region body
PF: predicated region fallthrough
CT: control target
= control target key end

     0   :  { %s6_s0 = inlined_call_operand.hbm [shape: pred[8], index: 0, kind: output, shape index: {}]  }

// kernel: custom-call.55
= control target key start
LH: loop header
LB: loop body
LE: loop exit
PB: predicated region body
PF: predicated region fallthrough
CT: control target
= control target key end

     0   :  { %s350_s6 = smov 0   ;;  %s352_s7 = smov 0   ;;  %s397_s0 = inlined_call_operand.vmem [shape: f32[8,3,3], index: 0, kind: input, shape index: {}]   ;;  %s398_s1 = inlined_call_operand.vmem [shape: f32[8,3,3], index: 1, kind: output, shape index: {}]  }
   0x1   :  { %s354_s8 = smov 0  }
   0x2 LB: > { %s272_s9 = sadd.s32 4294967295, %s337_s8   ;;  %s26_s10 = sadd.s32 1, %s333_s7  ;;  %s337_s8 = sphi %s354_s8, %s7_s8   ;;  %s333_s7 = sphi %s352_s7, %s400_s7   ;;  %s329_s6 = sphi %s350_s6, %s399_s6  }
   0x3   : > { %p28_p0 = scmp.ge.s32.totalorder %s26_s10, 8  ;;  %p274_p1 = scmp.ge.s32.totalorder %s337_s8, 8 }
   0x4   : > { %s42_s11 = sand.u32 (!%p274_p1), 1, %s337_s8   ;;  %s276_s12 = sshll.u32 (!%p274_p1), %s333_s7, 2 }
   0x5   : > { %s402_s10 = smov (%p28_p0, %s26_s10), 0  ;;  %40 = sbr.rel (%p274_p1) target bundleno = 12 (0xc), region = 16 }
   0x6   : > { %s275_s13 = sshll.u32 (!%p274_p1), %s42_s11, 2  ;;  %s48_s16 = scalar_lea.vmem (!%p274_p1), %s397_s0, %s276_s12 }
   0x7   : > { %s44_s17 = scalar_lea.vmem (!%p274_p1), [#allocation1], %s275_s13 }
   0xa   : > { %v65_v0 = vld [vmem:[%s48_s16] sm:$0xf] }
   0xb   : > { %66 = vst [vmem:[%s44_s17] sm:$0xf] %v65_v0 }
   0xc PF: > { %p277_p2 = scmp.ge.s32.totalorder %s337_s8, 1  ;;  %p83_p3 = scmp.lt.s32.totalorder %s337_s8, 9 }
   0xe   : > { %p84_p4 = pnand %p277_p2, %p83_p3 }
   0xf   : > { %s377_s18 = sand.u32 (!%p84_p4), 1, %s272_s9   ;;  %s281_s22 = sshll.u32 (!%p84_p4), %s329_s6, 2 }
  0x10   : > { %87 = sbr.rel (%p84_p4) target bundleno = 544 (0x220), region = 50  ;;  %s278_s19 = sshll.u32 (!%p84_p4), %s377_s18, 2 }
  0x11   : > { %s96_s20 = scalar_lea.vmem (!%p84_p4), [#allocation1], %s278_s19  ;;  %s100_s21 = scalar_lea.vmem (!%p84_p4), [#allocation3], %s278_s19 }
  0x12   : > { %s184_s25 = scalar_lea.vmem (!%p84_p4), %s398_s1, %s281_s22 }
  0x15   : > { %v339_v1 = vmov 0.0   ;;  %v104_v5 = vld [vmem:[%s96_s20] sm:$0xf]  ;;  %vm107_vm0 = vcmask 7168   ;;  %vm125_vm1 = vcmask 15368   ;;  %vm142_vm2 = vcmask 1047553  }
  0x16   : > { %106 = vst [vmem:[#allocation2] sm:$0xff] %v339_v1  ;;  %105 = vst [vmem:[#allocation0] sm:$0xf] %v104_v5  ;;  %vm147_vm4 = vcmask 23568   ;;  %vm164_vm5 = vcmask 1047554  }
  0x17   : > { %vm143_vm3 = vmand %vm125_vm1, %vm142_vm2 }
  0x18   : > { %vm165_vm6 = vmand %vm147_vm4, %vm164_vm5 }
  0x1d   : > { %v108_v2 = vld [vmem:[#allocation2] ss:$0 sm:$0xff]  ;;  %v109_v6 = vld [vmem:[#allocation0] ss:$0 sm:$0xff]  ;;  %v129_v18 = vld [vmem:[#allocation0 + $0x1] ss:$0 sm:$0xff] }
  0x1e   : > { %v110_v3 = vmul.f32 %v108_v2, %v108_v2  ;;  %v117_v4 = vmul.f32 0.0, %v108_v2  ;;  %v115_v10 = vld [vmem:[#allocation0] sm:$0xff] }
  0x1f   : > { %v151_v30 = vld [vmem:[#allocation0 + $0x2] ss:$0 sm:$0xff] }
  0x20   : > { %111 = vadd.xlane.f32.xlu0 %v110_v3 }
  0x24   : > { %118 = vadd.xlane.f32.xlu0 %v117_v4 }
  0xa9   : > { %v112_v7 = vpop.xlane.xlu0 %111 }
  0xaa   : > { %v113_v8 = vsub.f32 %v109_v6, %v112_v7 }
  0xac   : > { %309 = vrsqrt.f32 %v113_v8 }
  0xad   : > { %v119_v9 = vpop.xlane.xlu0 %118 }
  0xae   : > { %v120_v11 = vsub.f32 %v115_v10, %v119_v9 }
  0xb9   : > { %v310_v12 = vpop.eup %309 }
  0xba   : > { %v121_v13 = vmul.f32 %v310_v12, %v120_v11 }
  0xbc   : > { %v122_v14 = vsel %vm107_vm0, %v121_v13, 0.0 }
  0xbd   : > { %124 = vst [vmem:[#allocation2] sm:$0xff] %v122_v14 }
  0xc4   : > { %v127_v15 = vld [vmem:[#allocation2 + $0x1] ss:$0 sm:$0xff] }
  0xc5   : > { %v130_v16 = vmul.f32 %v127_v15, %v127_v15  ;;  %v137_v17 = vmul.f32 %v127_v15, %v122_v14 }
  0xc7   : > { %131 = vadd.xlane.f32.xlu1 %v130_v16 }
  0xcb   : > { %138 = vadd.xlane.f32.xlu1 %v137_v17 }
 0x150   : > { %v132_v19 = vpop.xlane.xlu1 %131 }
 0x151   : > { %v133_v20 = vsub.f32 %v129_v18, %v132_v19 }
 0x153   : > { %311 = vrsqrt.f32 %v133_v20 }
 0x154   : > { %v139_v21 = vpop.xlane.xlu1 %138 }
 0x155   : > { %v140_v22 = vsub.f32 %v115_v10, %v139_v21 }
 0x160   : > { %v312_v23 = vpop.eup %311 }
 0x161   : > { %v141_v24 = vmul.f32 %v312_v23, %v140_v22 }
 0x163   : > { %v144_v25 = vsel %vm143_vm3, %v141_v24, 0.0 }
 0x164   : > { %v145_v26 = vadd.f32 %v144_v25, %v122_v14 }
 0x166   : > { %146 = vst [vmem:[#allocation2] sm:$0xff] %v145_v26 }
 0x16d   : > { %v149_v27 = vld [vmem:[#allocation2 + $0x2] ss:$0 sm:$0xff] }
 0x16e   : > { %v159_v28 = vmul.f32 %v149_v27, %v145_v26  ;;  %v152_v29 = vmul.f32 %v149_v27, %v149_v27 }
 0x170   : > { %160 = vadd.xlane.f32.xlu1 %v159_v28  ;;  %153 = vadd.xlane.f32.xlu0 %v152_v29 }
 0x1f9   : > { %v154_v31 = vpop.xlane.xlu0 %153  ;;  %v161_v33 = vpop.xlane.xlu1 %160 }
 0x1fa   : > { %v155_v32 = vsub.f32 %v151_v30, %v154_v31  ;;  %v162_v34 = vsub.f32 %v115_v10, %v161_v33 }
 0x1fc   : > { %313 = vrsqrt.f32 %v155_v32 }
 0x209   : > { %v314_v35 = vpop.eup %313 }
 0x20a   : > { %v163_v36 = vmul.f32 %v314_v35, %v162_v34 }
 0x20c   : > { %v166_v37 = vsel %vm165_vm6, %v163_v36, 0.0 }
 0x20d   : > { %v167_v38 = vadd.f32 %v166_v37, %v145_v26 }
 0x20f   : > { %168 = vst [vmem:[#allocation2] sm:$0xff] %v167_v38 }
 0x216   : > { %v173_v39 = vld [vmem:[#allocation2] sm:$0xf] }
 0x217   : > { %176 = vst [vmem:[%s100_s21] sm:$0xf] %v173_v39 }
 0x21e   : > { %v201_v40 = vld [vmem:[%s100_s21] sm:$0xf] }
 0x21f   : > { %202 = vst [vmem:[%s184_s25] sm:$0xf] %v201_v40 }
 0x220 PF: > { %s7_s8 = sadd.s32 1, %s337_s8   ;;  %s399_s6 = smov %s333_s7 }
 0x221   : > { %p4_p5 = scmp.ge.s32.totalorder %s7_s8, 10   ;;  %s400_s7 = smov %s402_s10 }
 0x223   :  { %6 = sbr.rel (!%p4_p5) target bundleno = 2 (0x2), region = 114 }

// kernel: custom-call.56
= control target key start
LH: loop header
LB: loop body
LE: loop exit
PB: predicated region body
PF: predicated region fallthrough
CT: control target
= control target key end

     0   :  { %s350_s6 = smov 0   ;;  %s352_s7 = smov 0   ;;  %s397_s0 = inlined_call_operand.vmem [shape: f32[8,1,3,3], index: 0, kind: input, shape index: {}]   ;;  %s398_s1 = inlined_call_operand.vmem [shape: f32[8,1,3,3], index: 1, kind: output, shape index: {}]  }
   0x1   :  { %s354_s8 = smov 0  }
   0x2 LB: > { %s276_s9 = sadd.s32 4294967295, %s337_s8   ;;  %s33_s10 = sadd.s32 1, %s333_s7  ;;  %s337_s8 = sphi %s354_s8, %s7_s8   ;;  %s333_s7 = sphi %s352_s7, %s400_s7   ;;  %s329_s6 = sphi %s350_s6, %s399_s6  }
   0x3   : > { %p35_p0 = scmp.ge.s32.totalorder %s33_s10, 8  ;;  %p278_p1 = scmp.ge.s32.totalorder %s337_s8, 8 }
   0x4   : > { %s49_s11 = sand.u32 (!%p278_p1), 1, %s337_s8   ;;  %s280_s12 = sshll.u32 (!%p278_p1), %s333_s7, 2 }
   0x5   : > { %s402_s10 = smov (%p35_p0, %s33_s10), 0  ;;  %47 = sbr.rel (%p278_p1) target bundleno = 12 (0xc), region = 16 }
   0x6   : > { %s279_s13 = sshll.u32 (!%p278_p1), %s49_s11, 2  ;;  %s56_s16 = scalar_lea.vmem (!%p278_p1), %s397_s0, %s280_s12 }
   0x7   : > { %s51_s17 = scalar_lea.vmem (!%p278_p1), [#allocation1], %s279_s13 }
   0xa   : > { %v73_v0 = vld [vmem:[%s56_s16] sm:$0xf] }
   0xb   : > { %74 = vst [vmem:[%s51_s17] sm:$0xf] %v73_v0 }
   0xc PF: > { %p281_p2 = scmp.ge.s32.totalorder %s337_s8, 1  ;;  %p91_p3 = scmp.lt.s32.totalorder %s337_s8, 9 }
   0xe   : > { %p92_p4 = pnand %p281_p2, %p91_p3 }
  0x10   : > { %95 = sbr.rel (%p92_p4) target bundleno = 500 (0x1f4), region = 50 }
  0x15   : > { %s377_s18 = sand.u32 1, %s276_s9   ;;  %v114_v1 = vlaneseq  ;;  %v339_v11 = vmov -1.0   ;;  %s285_s22 = sshll.u32 %s329_s6, 2 }
  0x16   : > { %s282_s19 = sshll.u32 %s377_s18, 2  ;;  %s183_s25 = scalar_lea.vmem %s398_s1, %s285_s22 }
  0x17   : > { %s104_s20 = scalar_lea.vmem [#allocation1], %s282_s19  ;;  %v115_v3 = vand.u32 127, %v114_v1  ;;  %v118_v4 = vshrl.u32 %v114_v1, 7  ;;  %s108_s21 = scalar_lea.vmem [#allocation3], %s282_s19 }
  0x18   : > { %v112_v2 = vld [vmem:[%s104_s20] sm:$0xf] }
  0x19   : > { %113 = vst [vmem:[#allocation0] sm:$0xf] %v112_v2  ;;  %vm116_vm0 = vcmp.lt.s32.totalorder %v115_v3, 3  ;;  %vm125_vm1 = vcmp.ge.s32.totalorder %v118_v4, %v115_v3  ;;  %vm120_vm2 = vcmp.eq.s32.totalorder %v118_v4, %v115_v3  ;;  %vm139_vm4 = vcmp.eq.s32.totalorder %v115_v3, 0 }
  0x1a   : > { %vm126_vm3 = vmand %vm125_vm1, %vm116_vm0  ;;  %vm136_vm5 = vcmp.eq.s32.totalorder %v115_v3, %v118_v4  ;;  %v140_v12 = vsel %vm139_vm4, 1.0, %v339_v11  ;;  %vm147_vm6 = vcmp.eq.s32.totalorder %v115_v3, 1  ;;  %vm157_vm7 = vcmp.eq.s32.totalorder %v115_v3, 2 }
  0x1b   : > { %v141_v13 = vsel %vm136_vm5, %v140_v12, 0.0 }
  0x20   : > { %v121_v5 = vld [vmem:[#allocation0] sm:$0xff] }
  0x21   : > { %v122_v6 = vsel %vm120_vm2, %v121_v5, 0.0  ;;  %v127_v7 = vsel %vm126_vm3, %v121_v5, 0.0 }
  0x22   : > { %123 = vadd.xlane.f32.xlu0 %v122_v6 }
  0xab   : > { %v124_v8 = vpop.xlane.xlu0 %123 }
  0xac   : > { %313 = vrcp.f32 %v124_v8  ;;  %vm164_vm8 = vweird.f32 %v124_v8 }
  0xb9   : > { %v314_v9 = vpop.eup %313 }
  0xba   : > { %v129_v10 = vmul.f32 %v314_v9, %v127_v7 }
  0xbc   : > { %130 = vst [vmem:[#allocation4] sm:$0xff] %v129_v10 }
  0xc3   : > { %v143_v14 = vld [vmem:[#allocation4 + $0x1] ss:$0 sm:$0xff]  ;;  %v153_v17 = vld [vmem:[#allocation4 + $0x2] ss:$0 sm:$0xff] }
  0xc4   : > { %v144_v15 = vxor.u32 2147483648, %v143_v14  ;;  %v154_v19 = vxor.u32 2147483648, %v153_v17 }
  0xc6   : > { %v148_v16 = vmul.f32 %v144_v15, %v141_v13 }
  0xc8   : > { %149 = vadd.xlane.f32.xlu0 %v148_v16 }
 0x151   : > { %v150_v18 = vpop.xlane.xlu0 %149 }
 0x152   : > { %v151_v20 = vsel %vm147_vm6, %v150_v18, %v141_v13 }
 0x153   : > { %v158_v21 = vmul.f32 %v154_v19, %v151_v20 }
 0x155   : > { %159 = vadd.xlane.f32.xlu1 %v158_v21 }
 0x1de   : > { %v160_v22 = vpop.xlane.xlu1 %159 }
 0x1df   : > { %v161_v23 = vsel %vm157_vm7, %v160_v22, %v151_v20 }
 0x1e0   : > { %v163_v24 = vmul.f32 %v314_v9, %v161_v23 }
 0x1e2   : > { %v165_v25 = vsel %vm164_vm8, %v161_v23, %v163_v24 }
 0x1e3   : > { %166 = vst [vmem:[#allocation2] sm:$0xff] %v165_v25 }
 0x1ea   : > { %v171_v26 = vld [vmem:[#allocation2] sm:$0xf] }
 0x1eb   : > { %174 = vst [vmem:[%s108_s21] sm:$0xf] %v171_v26 }
 0x1f2   : > { %v200_v27 = vld [vmem:[%s108_s21] sm:$0xf] }
 0x1f3   : > { %201 = vst [vmem:[%s183_s25] sm:$0xf] %v200_v27 }
 0x1f4 PF: > { %s7_s8 = sadd.s32 1, %s337_s8   ;;  %s399_s6 = smov %s333_s7 }
 0x1f5   : > { %p4_p5 = scmp.ge.s32.totalorder %s7_s8, 10   ;;  %s400_s7 = smov %s402_s10 }
 0x1f7   :  { %6 = sbr.rel (!%p4_p5) target bundleno = 2 (0x2), region = 112 }

// kernel: position_transform_forward.1
= control target key start
LH: loop header
LB: loop body
LE: loop exit
PB: predicated region body
PF: predicated region fallthrough
CT: control target
= control target key end

     0   :  { %14 = vsyncpa [#allocation3], 0  ;;  %s1704_s0 = inlined_call_operand.vmem [shape: f32[8,64], index: 0, kind: input, shape index: {}]   ;;  %s1705_s1 = inlined_call_operand.hbm [shape: bf16[64,512], index: 1, kind: input, shape index: {}]   ;;  %s1706_s2 = inlined_call_operand.vmem [shape: f32[1,512], index: 2, kind: input, shape index: {}]   ;;  %s1707_s3 = inlined_call_operand.vmem [shape: f32[1,512], index: 3, kind: input, shape index: {}]   ;;  %s1708_s4 = inlined_call_operand.hbm [shape: bf16[512,256], index: 4, kind: input, shape index: {}]   ;;  %s1709_s5 = inlined_call_operand.vmem [shape: f32[1,256], index: 5, kind: input, shape index: {}]   ;;  %s1710_s6 = inlined_call_operand.vmem [shape: f32[1,256], index: 6, kind: input, shape index: {}]   ;;  %s1711_s7 = inlined_call_operand.hbm [shape: bf16[256,128], index: 7, kind: input, shape index: {}]   ;;  %s1712_s8 = inlined_call_operand.vmem [shape: f32[1,128], index: 8, kind: input, shape index: {}]   ;;  %s1713_s9 = inlined_call_operand.vmem [shape: f32[8,128], index: 9, kind: output, shape index: {}]  }
   0x1   :  { %15 = vsyncpa [#allocation5], 0  ;;  %s1555_s30 = smov [#allocation4]  }
   0x2   :  { %s39_s10 = sshll.u32 %s1555_s30, 4  ;;  %s40_s10 = int_to_ptr.vmem [resolvable:$true] %s39_s10 }
   0x3   :  { %s1499_s11 = scalar_lea.vmem %s40_s10, 8192  ;;  %p1504_p1 = scmp.lt.s32.totalorder %s40_s10, %s40_s10 }
   0x4   :  { %p1500_p0 = scmp.ne.s32.totalorder %s40_s10, %s1499_s11  ;;  %p1505_p2 = scmp.lt.s32.totalorder %s1499_s11, %s1499_s11 }
   0x6   :  { %p1506_p3 = por %p1505_p2, %p1504_p1 }
   0x8   :  { %p1507_p4 = pnand %p1506_p3, %p1500_p0 }
   0xa   :  { %1510 = shalt.err (!%p1507_p4)
}
   0xb   :  { %s1556_s12 = smov 128   ;;  %s1557_s13 = smov 8  }
   0xc   :  { %45 = dma.hbm_to_vmem [thread:$0]  %s1708_s4, 8192, %s40_s10, [#allocation5], %s1556_s12, %s1556_s12, %s1557_s13  }
   0xd   :  { %s1558_s16 = smov [#allocation2]  }
   0xe   :  { %s23_s17 = sshll.u32 %s1558_s16, 4  ;;  %s24_s17 = int_to_ptr.vmem [resolvable:$true] %s23_s17 }
   0xf   :  { %s1519_s18 = scalar_lea.vmem %s24_s17, 2048  ;;  %p1524_p6 = scmp.lt.s32.totalorder %s24_s17, %s24_s17 }
  0x10   :  { %p1520_p5 = scmp.ne.s32.totalorder %s24_s17, %s1519_s18  ;;  %p1525_p7 = scmp.lt.s32.totalorder %s1519_s18, %s1519_s18 }
  0x12   :  { %p1526_p8 = por %p1525_p7, %p1524_p6 }
  0x14   :  { %p1527_p9 = pnand %p1526_p8, %p1520_p5 }
  0x16   :  { %1530 = shalt.err (!%p1527_p9)
}
  0x17   :  { %s1559_s19 = smov 256   ;;  %s1560_s20 = smov 16  }
  0x18   :  { %29 = dma.hbm_to_vmem [thread:$0]  %s1705_s1, 2048, %s24_s17, [#allocation3], %s1559_s19, %s1559_s19, %s1560_s20  }
  0x19   :  { %s1561_s23 = smov [#allocation6]  }
  0x1a   :  { %s55_s24 = sshll.u32 %s1561_s23, 4  ;;  %s56_s24 = int_to_ptr.vmem [resolvable:$true] %s55_s24 }
  0x1b   :  { %s1539_s4 = scalar_lea.vmem %s56_s24, 2048  ;;  %p1544_p11 = scmp.lt.s32.totalorder %s56_s24, %s56_s24 }
  0x1c   :  { %p1540_p10 = scmp.ne.s32.totalorder %s56_s24, %s1539_s4  ;;  %p1545_p12 = scmp.lt.s32.totalorder %s1539_s4, %s1539_s4 }
  0x1e   :  { %p1546_p13 = por %p1545_p12, %p1544_p11 }
  0x20   :  { %p1547_p0 = pnand %p1546_p13, %p1540_p10 }
  0x22   :  { %1550 = shalt.err (!%p1547_p0)
}
  0x23   :  { %s1562_s25 = smov 64   ;;  %s1563_s26 = smov 4  }
  0x24   :  { %61 = dma.hbm_to_vmem [thread:$0]  %s1711_s7, 2048, %s56_s24, [#allocation5], %s1562_s25, %s1562_s25, %s1563_s26  }
  0x25   :  { %1551 = dma.done.wait [#allocation3], 2048  }
  0x26   :  { %1552 = vsyncadd [#allocation3], 4294965248 }
  0x27   :  { %1553 = dma.done.wait [#allocation5], 10240  }
  0x28   :  { %1554 = vsyncadd [#allocation5], 4294957056  ;;  %v1564_v0 = vmov 0   ;;  %v1343_v1 = vld [vmem:[#allocation2 + $0x64] ss:$16 sps:$4 sm:$0xff]   ;;  %vm172_vm0 = vcmask 523264  }
  0x29   :  { %208 = vmatprep.mubr.bf16.mxu1 %v1564_v0  ;;  %v1345_v2 = vld [vmem:[#allocation2 + $0x60] ss:$16 sps:$4 sm:$0xff]   ;;  %184 = vmatprep.subr.bf16.mxu1 %v1343_v1  ;;  %v1346_v3 = vld [vmem:[#allocation2 + $0x44] ss:$16 sps:$4 sm:$0xff]   ;;  %v1357_v10 = vld [vmem:[#allocation2 + $0x6c] ss:$16 sps:$4 sm:$0xff]  }
  0x2a   :  { %185 = vmatpush1.bf16.msra.mxu1 %v1345_v2  ;;  %v1348_v4 = vld [vmem:[#allocation2 + $0x40] ss:$16 sps:$4 sm:$0xff]   ;;  %v1349_v5 = vld [vmem:[#allocation2 + $0x24] ss:$16 sps:$4 sm:$0xff]   ;;  %v1355_v11 = vld [vmem:[#allocation2 + $0x68] ss:$16 sps:$4 sm:$0xff]  }
  0x2b   :  { %186 = vmatprep.subr.bf16.mxu1 %v1346_v3  ;;  %v1351_v6 = vld [vmem:[#allocation2 + $0x20] ss:$16 sps:$4 sm:$0xff]   ;;  %v1352_v7 = vld [vmem:[#allocation2 + $0x4] ss:$16 sps:$4 sm:$0xff]   ;;  %v1360_v13 = vld [vmem:[#allocation2 + $0x4c] ss:$16 sps:$4 sm:$0xff]  }
  0x2c   :  { %v1354_v8 = vld [vmem:[#allocation2] ss:$16 sps:$4 sm:$0xff]   ;;  %v1358_v14 = vld [vmem:[#allocation2 + $0x48] ss:$16 sps:$4 sm:$0xff]   ;;  %v1363_v15 = vld [vmem:[#allocation2 + $0x2c] ss:$16 sps:$4 sm:$0xff]  }
  0x2d   :  { %v74_v9 = vld [vmem:[%s1704_s0] sm:$0xff]  ;;  %v1361_v16 = vld [vmem:[#allocation2 + $0x28] ss:$16 sps:$4 sm:$0xff]   ;;  %v1366_v17 = vld [vmem:[#allocation2 + $0xc] ss:$16 sps:$4 sm:$0xff]  }
  0x2e   :  { %187 = vmatpush1.bf16.msra.mxu1 %v1348_v4  ;;  %v75_v12 = vpack.c.bf16 %v74_v9, %v74_v9  ;;  %v1364_v18 = vld [vmem:[#allocation2 + $0x8] ss:$16 sps:$4 sm:$0xff]   ;;  %v1367_v19 = vld [vmem:[#allocation4 + $0x74] ss:$8 sps:$4 sm:$0xff]   ;;  %v1373_v23 = vld [vmem:[#allocation4 + $0x64] ss:$8 sps:$4 sm:$0xff]  }
  0x2f   :  { %188 = vmatprep.subr.bf16.mxu1 %v1349_v5  ;;  %v1371_v20 = vld [vmem:[#allocation4 + $0x174] ss:$8 sps:$4 sm:$0xff]   ;;  %v1369_v21 = vld [vmem:[#allocation4 + $0x170] ss:$8 sps:$4 sm:$0xff]   ;;  %839 = vmatprep.subr.bf16.mxu0 %v1367_v19  ;;  %v1377_v24 = vld [vmem:[#allocation4 + $0x164] ss:$8 sps:$4 sm:$0xff]  }
  0x30   :  { %v1372_v22 = vld [vmem:[#allocation4 + $0x70] ss:$8 sps:$4 sm:$0xff]   ;;  %v1375_v25 = vld [vmem:[#allocation4 + $0x160] ss:$8 sps:$4 sm:$0xff]   ;;  %v1379_v27 = vld [vmem:[#allocation4 + $0x54] ss:$8 sps:$4 sm:$0xff]  }
  0x31   :  { %840 = vmatpush1.bf16.msra.mxu0 %v1372_v22  ;;  %v1378_v26 = vld [vmem:[#allocation4 + $0x60] ss:$8 sps:$4 sm:$0xff]   ;;  %v1383_v28 = vld [vmem:[#allocation4 + $0x154] ss:$8 sps:$4 sm:$0xff]   ;;  %v1381_v29 = vld [vmem:[#allocation4 + $0x150] ss:$8 sps:$4 sm:$0xff]  }
  0x32   :  { %189 = vmatpush1.bf16.msra.mxu1 %v1351_v6  ;;  %841 = vmatprep.subr.bf16.mxu0 %v1373_v23  ;;  %v1384_v30 = vld [vmem:[#allocation4 + $0x50] ss:$8 sps:$4 sm:$0xff]   ;;  %v1385_v31 = vld [vmem:[#allocation4 + $0x44] ss:$8 sps:$4 sm:$0xff]   ;;  %v1387_v33 = vld [vmem:[#allocation4 + $0x140] ss:$8 sps:$4 sm:$0xff]  }
  0x33   :  { %190 = vmatprep.subr.bf16.mxu1 %v1352_v7  ;;  %v1389_v32 = vld [vmem:[#allocation4 + $0x144] ss:$8 sps:$4 sm:$0xff]   ;;  %v1390_v34 = vld [vmem:[#allocation4 + $0x40] ss:$8 sps:$4 sm:$0xff]   ;;  %v1391_v35 = vld [vmem:[#allocation4 + $0x34] ss:$8 sps:$4 sm:$0xff]  }
  0x34   :  { %v1395_v36 = vld [vmem:[#allocation4 + $0x134] ss:$8 sps:$4 sm:$0xff]   ;;  %v1393_v37 = vld [vmem:[#allocation4 + $0x130] ss:$8 sps:$4 sm:$0xff]   ;;  %v1397_v39 = vld [vmem:[#allocation4 + $0x24] ss:$8 sps:$4 sm:$0xff]  }
  0x35   :  { %842 = vmatpush1.bf16.msra.mxu0 %v1378_v26  ;;  %v1396_v38 = vld [vmem:[#allocation4 + $0x30] ss:$8 sps:$4 sm:$0xff]   ;;  %v1401_v40 = vld [vmem:[#allocation4 + $0x124] ss:$8 sps:$4 sm:$0xff]   ;;  %v1399_v41 = vld [vmem:[#allocation4 + $0x120] ss:$8 sps:$4 sm:$0xff]  }
  0x36   :  { %191 = vmatpush1.bf16.msra.mxu1 %v1354_v8  ;;  %843 = vmatprep.subr.bf16.mxu0 %v1379_v27  ;;  %v1402_v42 = vld [vmem:[#allocation4 + $0x20] ss:$8 sps:$4 sm:$0xff]   ;;  %v1403_v43 = vld [vmem:[#allocation4 + $0x14] ss:$8 sps:$4 sm:$0xff]   ;;  %v1405_v45 = vld [vmem:[#allocation4 + $0x110] ss:$8 sps:$4 sm:$0xff]  }
  0x37   :  { %225 = vmatprep.subr.bf16.mxu1 %v1357_v10  ;;  %v1407_v44 = vld [vmem:[#allocation4 + $0x114] ss:$8 sps:$4 sm:$0xff]   ;;  %v1408_v46 = vld [vmem:[#allocation4 + $0x10] ss:$8 sps:$4 sm:$0xff]   ;;  %v1409_v47 = vld [vmem:[#allocation4 + $0x4] ss:$8 sps:$4 sm:$0xff]  }
  0x38   :  { %v1413_v48 = vld [vmem:[#allocation4 + $0x104] ss:$8 sps:$4 sm:$0xff]   ;;  %v1411_v49 = vld [vmem:[#allocation4 + $0x100] ss:$8 sps:$4 sm:$0xff]   ;;  %v1415_v51 = vld [vmem:[#allocation4 + $0xf4] ss:$8 sps:$4 sm:$0xff]  }
  0x39   :  { %1227 = vmatmul.mubr.msk.bf16.vlgmr.msra.gmra.mxu1 %vm172_vm0, %v75_v12  ;;  %844 = vmatpush1.bf16.msra.mxu0 %v1384_v30  ;;  %v1414_v50 = vld [vmem:[#allocation4] ss:$8 sps:$4 sm:$0xff]   ;;  %v1419_v52 = vld [vmem:[#allocation4 + $0x1f4] ss:$8 sps:$4 sm:$0xff]   ;;  %v1417_v53 = vld [vmem:[#allocation4 + $0x1f0] ss:$8 sps:$4 sm:$0xff]  }
  0x3a   :  { %226 = vmatpush1.bf16.msra.mxu1 %v1355_v11  ;;  %249 = vmatprep.mubr.bf16.mxu1 %v1564_v0  ;;  %v1420_v54 = vld [vmem:[#allocation4 + $0xf0] ss:$8 sps:$4 sm:$0xff]   ;;  %v1421_v55 = vld [vmem:[#allocation4 + $0xe4] ss:$8 sps:$4 sm:$0xff]   ;;  %v1423_v57 = vld [vmem:[#allocation4 + $0x1e0] ss:$8 sps:$4 sm:$0xff]  }
  0x3b   :  { %227 = vmatprep.subr.bf16.mxu1 %v1360_v13  ;;  %845 = vmatprep.subr.bf16.mxu0 %v1385_v31  ;;  %v1425_v56 = vld [vmem:[#allocation4 + $0x1e4] ss:$8 sps:$4 sm:$0xff]   ;;  %v1426_v58 = vld [vmem:[#allocation4 + $0xe0] ss:$8 sps:$4 sm:$0xff]   ;;  %v1427_v59 = vld [vmem:[#allocation4 + $0xd4] ss:$8 sps:$4 sm:$0xff]  }
  0x3c   :  { %v1431_v60 = vld [vmem:[#allocation4 + $0x1d4] ss:$8 sps:$4 sm:$0xff]   ;;  %v1429_v61 = vld [vmem:[#allocation4 + $0x1d0] ss:$8 sps:$4 sm:$0xff]   ;;  %v1433_v63 = vld [vmem:[#allocation4 + $0xc4] ss:$8 sps:$4 sm:$0xff]  }
  0x3d   :  { %846 = vmatpush1.bf16.msra.mxu0 %v1390_v34  ;;  %v1432_v62 = vld [vmem:[#allocation4 + $0xd0] ss:$8 sps:$4 sm:$0xff]   ;;  %v1437_v0 = vld [vmem:[#allocation4 + $0x1c4] ss:$8 sps:$4 sm:$0xff]   ;;  %v1435_v1 = vld [vmem:[#allocation4 + $0x1c0] ss:$8 sps:$4 sm:$0xff]  }
  0x3e   :  { %228 = vmatpush1.bf16.msra.mxu1 %v1358_v14  ;;  %847 = vmatprep.subr.bf16.mxu0 %v1391_v35  ;;  %v1438_v2 = vld [vmem:[#allocation4 + $0xc0] ss:$8 sps:$4 sm:$0xff]   ;;  %v1439_v3 = vld [vmem:[#allocation4 + $0xb4] ss:$8 sps:$4 sm:$0xff]   ;;  %v1441_v5 = vld [vmem:[#allocation4 + $0x1b0] ss:$8 sps:$4 sm:$0xff]  }
  0x3f   :  { %229 = vmatprep.subr.bf16.mxu1 %v1363_v15  ;;  %v1443_v4 = vld [vmem:[#allocation4 + $0x1b4] ss:$8 sps:$4 sm:$0xff]   ;;  %v1444_v6 = vld [vmem:[#allocation4 + $0xb0] ss:$8 sps:$4 sm:$0xff]   ;;  %v1445_v7 = vld [vmem:[#allocation4 + $0xa4] ss:$8 sps:$4 sm:$0xff]  }
  0x40   :  { %v1449_v8 = vld [vmem:[#allocation4 + $0x1a4] ss:$8 sps:$4 sm:$0xff]   ;;  %v1447_v9 = vld [vmem:[#allocation4 + $0x1a0] ss:$8 sps:$4 sm:$0xff]   ;;  %v1451_v11 = vld [vmem:[#allocation4 + $0x94] ss:$8 sps:$4 sm:$0xff]  }
  0x41   :  { %848 = vmatpush1.bf16.msra.mxu0 %v1396_v38  ;;  %v1450_v10 = vld [vmem:[#allocation4 + $0xa0] ss:$8 sps:$4 sm:$0xff]   ;;  %v1453_v13 = vld [vmem:[#allocation4 + $0x190] ss:$8 sps:$4 sm:$0xff]   ;;  %v1457_v15 = vld [vmem:[#allocation4 + $0x84] ss:$8 sps:$4 sm:$0xff]  }
  0x42   :  { %230 = vmatpush1.bf16.msra.mxu1 %v1361_v16  ;;  %849 = vmatprep.subr.bf16.mxu0 %v1397_v39  ;;  %v1456_v14 = vld [vmem:[#allocation4 + $0x90] ss:$8 sps:$4 sm:$0xff]   ;;  %v1461_v16 = vld [vmem:[#allocation4 + $0x184] ss:$8 sps:$4 sm:$0xff]  }
  0x43   :  { %231 = vmatprep.subr.bf16.mxu1 %v1366_v17  ;;  %v1459_v17 = vld [vmem:[#allocation4 + $0x180] ss:$8 sps:$4 sm:$0xff]  }
  0x45   :  { %850 = vmatpush1.bf16.msra.mxu0 %v1402_v42 }
  0x46   :  { %232 = vmatpush1.bf16.msra.mxu1 %v1364_v18  ;;  %851 = vmatprep.subr.bf16.mxu0 %v1403_v43  ;;  %v1462_v18 = vld [vmem:[#allocation4 + $0x80] ss:$8 sps:$4 sm:$0xff]  }
  0x47   :  { %880 = vmatprep.subr.bf16.mxu1 %v1371_v20 }
  0x49   :  { %1228 = vmatmul.mubr.msk.bf16.vlgmr.msra.gmra.mxu1 %vm172_vm0, %v75_v12  ;;  %852 = vmatpush1.bf16.msra.mxu0 %v1408_v46  ;;  %v1455_v12 = vld [vmem:[#allocation4 + $0x194] ss:$8 sps:$4 sm:$0xff]  }
  0x4a   :  { %881 = vmatpush1.bf16.msra.mxu1 %v1369_v21  ;;  %853 = vmatprep.subr.bf16.mxu0 %v1409_v47 }
  0x4b   :  { %882 = vmatprep.subr.bf16.mxu1 %v1377_v24 }
  0x4d   :  { %854 = vmatpush1.bf16.msra.mxu0 %v1414_v50 }
  0x4e   :  { %883 = vmatpush1.bf16.msra.mxu1 %v1375_v25  ;;  %855 = vmatprep.subr.bf16.mxu0 %v1415_v51 }
  0x4f   :  { %884 = vmatprep.subr.bf16.mxu1 %v1383_v28 }
  0x51   :  { %856 = vmatpush2.bf16.msra.mxu0 %v1420_v54 }
  0x52   :  { %885 = vmatpush1.bf16.msra.mxu1 %v1381_v29  ;;  %857 = vmatprep.subr.bf16.mxu0 %v1421_v55 }
  0x53   :  { %886 = vmatprep.subr.bf16.mxu1 %v1389_v32 }
  0x55   :  { %858 = vmatpush2.bf16.msra.mxu0 %v1426_v58 }
  0x56   :  { %887 = vmatpush1.bf16.msra.mxu1 %v1387_v33  ;;  %859 = vmatprep.subr.bf16.mxu0 %v1427_v59 }
  0x57   :  { %888 = vmatprep.subr.bf16.mxu1 %v1395_v36 }
  0x59   :  { %860 = vmatpush2.bf16.msra.mxu0 %v1432_v62 }
  0x5a   :  { %889 = vmatpush1.bf16.msra.mxu1 %v1393_v37  ;;  %861 = vmatprep.subr.bf16.mxu0 %v1433_v63 }
  0x5b   :  { %890 = vmatprep.subr.bf16.mxu1 %v1401_v40 }
  0x5d   :  { %862 = vmatpush2.bf16.msra.mxu0 %v1438_v2 }
  0x5e   :  { %891 = vmatpush1.bf16.msra.mxu1 %v1399_v41  ;;  %863 = vmatprep.subr.bf16.mxu0 %v1439_v3 }
  0x5f   :  { %892 = vmatprep.subr.bf16.mxu1 %v1407_v44 }
  0x61   :  { %864 = vmatpush2.bf16.msra.mxu0 %v1444_v6 }
  0x62   :  { %893 = vmatpush1.bf16.msra.mxu1 %v1405_v45  ;;  %865 = vmatprep.subr.bf16.mxu0 %v1445_v7 }
  0x63   :  { %894 = vmatprep.subr.bf16.mxu1 %v1413_v48 }
  0x65   :  { %866 = vmatpush2.bf16.msra.mxu0 %v1450_v10 }
  0x66   :  { %895 = vmatpush1.bf16.msra.mxu1 %v1411_v49  ;;  %867 = vmatprep.subr.bf16.mxu0 %v1451_v11 }
  0x67   :  { %896 = vmatprep.subr.bf16.mxu1 %v1419_v52 }
  0x69   :  { %868 = vmatpush2.bf16.msra.mxu0 %v1456_v14 }
  0x6a   :  { %897 = vmatpush2.bf16.msra.mxu1 %v1417_v53  ;;  %869 = vmatprep.subr.bf16.mxu0 %v1457_v15 }
  0x6b   :  { %898 = vmatprep.subr.bf16.mxu1 %v1425_v56 }
  0x6d   :  { %870 = vmatpush2.bf16.msra.mxu0 %v1462_v18 }
  0x6e   :  { %899 = vmatpush2.bf16.msra.mxu1 %v1423_v57 }
  0x6f   :  { %900 = vmatprep.subr.bf16.mxu1 %v1431_v60 }
  0x72   :  { %901 = vmatpush2.bf16.msra.mxu1 %v1429_v61 }
  0x73   :  { %902 = vmatprep.subr.bf16.mxu1 %v1437_v0 }
  0x76   :  { %903 = vmatpush2.bf16.msra.mxu1 %v1435_v1 }
  0x77   :  { %904 = vmatprep.subr.bf16.mxu1 %v1443_v4 }
  0x7a   :  { %905 = vmatpush2.bf16.msra.mxu1 %v1441_v5 }
  0x7b   :  { %906 = vmatprep.subr.bf16.mxu1 %v1449_v8 }
  0x7e   :  { %907 = vmatpush2.bf16.msra.mxu1 %v1447_v9 }
  0x7f   :  { %908 = vmatprep.subr.bf16.mxu1 %v1455_v12 }
  0x82   :  { %909 = vmatpush2.bf16.msra.mxu1 %v1453_v13 }
  0x83   :  { %910 = vmatprep.subr.bf16.mxu1 %v1461_v16 }
  0x86   :  { %911 = vmatpush2.bf16.msra.mxu1 %v1459_v17 }
  0xf9   :  { %v1630_v19 = vpop.f32.mrf.mxu1 }
  0xfa   :  { %v260_v20 = vrot.slane %v1630_v19, 4 }
  0xfb   :  { %v1633_v21 = vpop.f32.mrf.mxu1 }
  0xfc   :  { %v261_v22 = vadd.f32 %v260_v20, %v1630_v19  ;;  %v266_v23 = vrot.slane %v1633_v21, 4 }
  0xfd   :  { %v214_v24 = vpop.f32.mrf.mxu1 }
  0xfe   :  { %v262_v25 = vrot.slane %v261_v22, 2  ;;  %v267_v26 = vadd.f32 %v266_v23, %v1633_v21 }
  0xff   :  { %v215_v27 = vpop.f32.mrf.mxu1 }
 0x100   :  { %v263_v28 = vadd.f32 %v262_v25, %v261_v22  ;;  %v268_v29 = vrot.slane %v267_v26, 2 }
 0x102   :  { %v264_v30 = vrot.slane %v263_v28, 1  ;;  %v269_v31 = vadd.f32 %v268_v29, %v267_v26 }
 0x104   :  { %v265_v32 = vadd.f32 %v264_v30, %v263_v28  ;;  %v270_v33 = vrot.slane %v269_v31, 1 }
 0x106   :  { %v1638_v34 = vmul.f32 0.125, %v265_v32  ;;  %v271_v35 = vadd.f32 %v270_v33, %v269_v31  ;;  %v1565_v33 = vmov 1966171168  }
 0x108   :  { %v289_v36 = vsub.f32 %v1630_v19, %v1638_v34  ;;  %v1642_v37 = vmul.f32 0.125, %v271_v35  ;;  %v340_v35 = vunpack.c.l.s4 %v1565_v33  ;;  %v1469_v33 = vld [vmem:[#allocation6 + $0x60] sm:$0xff]  }
 0x109   :  { %v1644_v38 = vpop.f32.mrf.mxu1 }
 0x10a   :  { %v293_v39 = vmul.f32 %v289_v36, %v289_v36  ;;  %v290_v40 = vsub.f32 %v1633_v21, %v1642_v37  ;;  %v272_v41 = vrot.slane %v1644_v38, 4  ;;  %v342_v36 = vlaneseq }
 0x10b   :  { %v1649_v42 = vpop.f32.mrf.mxu1 }
 0x10c   :  { %v297_v43 = vrot.slane %v293_v39, 4  ;;  %v294_v44 = vmul.f32 %v290_v40, %v290_v40  ;;  %v273_v45 = vadd.f32 %v272_v41, %v1644_v38  ;;  %v278_v46 = vrot.slane %v1649_v42, 4 }
 0x10d   :  { %v255_v47 = vpop.f32.mrf.mxu1  ;;  %v343_v40 = vshrl.u32 %v342_v36, 7  ;;  %v1471_v36 = vld [vmem:[#allocation6 + $0x58] sm:$0xff]  }
 0x10e   :  { %v303_v48 = vrot.slane %v294_v44, 4  ;;  %v274_v49 = vrot.slane %v273_v45, 2  ;;  %v279_v50 = vadd.f32 %v278_v46, %v1649_v42  ;;  %v298_v52 = vadd.f32 %v297_v43, %v293_v39 }
 0x10f   :  { %v256_v51 = vpop.f32.mrf.mxu1  ;;  %v341_v39 = vunpack.c.0.s8 %v340_v35  ;;  %v1470_v35 = vld [vmem:[#allocation6 + $0x20] sm:$0xff]  }
 0x110   :  { %v304_v53 = vadd.f32 %v303_v48, %v294_v44  ;;  %v275_v54 = vadd.f32 %v274_v49, %v273_v45  ;;  %v280_v55 = vrot.slane %v279_v50, 2  ;;  %v299_v59 = vrot.slane %v298_v52, 2 }
 0x111   :  { %v1656_v46 = vsub.s32 %v341_v39, %v343_v40  ;;  %v1472_v39 = vld [vmem:[#allocation6 + $0x18] sm:$0xff]  }
 0x112   :  { %v305_v56 = vrot.slane %v304_v53, 2  ;;  %v276_v57 = vrot.slane %v275_v54, 1  ;;  %v281_v58 = vadd.f32 %v280_v55, %v279_v50  ;;  %v300_v1 = vadd.f32 %v299_v59, %v298_v52  ;;  %v258_v52 = vld [vmem:[%s1706_s2] sm:$0xf] }
 0x113   :  { %v378_v55 = vsub.s32 3, %v343_v40 }
 0x114   :  { %v277_v60 = vadd.f32 %v276_v57, %v275_v54  ;;  %v282_v61 = vrot.slane %v281_v58, 1  ;;  %v306_v62 = vadd.f32 %v305_v56, %v304_v53  ;;  %v301_v7 = vrot.slane %v300_v1, 1 }
 0x115   :  { %v374_v53 = vsub.s32 2, %v343_v40  ;;  %v1664_v56 = vsub.s32 0, %v343_v40  ;;  %v1666_v57 = vsub.s32 1, %v343_v40  ;;  %v1473_v40 = vld [vmem:[#allocation6 + $0x50] sm:$0xff]  }
 0x116   :  { %v287_v63 = vmul.f32 0.125, %v277_v60  ;;  %v283_v0 = vadd.f32 %v282_v61, %v281_v58  ;;  %v307_v4 = vrot.slane %v306_v62, 1  ;;  %v302_v13 = vadd.f32 %v301_v7, %v300_v1 }
 0x118   :  { %v291_v2 = vsub.f32 %v1644_v38, %v287_v63  ;;  %v288_v3 = vmul.f32 0.125, %v283_v0  ;;  %v308_v10 = vadd.f32 %v307_v4, %v306_v62  ;;  %v321_v20 = vmul.f32 0.125, %v302_v13 }
 0x11a   :  { %v295_v5 = vmul.f32 %v291_v2, %v291_v2  ;;  %v292_v6 = vsub.f32 %v1649_v42, %v288_v3  ;;  %v322_v16 = vmul.f32 0.125, %v308_v10  ;;  %v325_v27 = vadd.f32 1e-05, %v321_v20  ;;  %v259_v10 = vld [vmem:[%s1707_s3] sm:$0xf] }
 0x11c   :  { %v309_v8 = vrot.slane %v295_v5, 4  ;;  %v296_v9 = vmul.f32 %v292_v6, %v292_v6  ;;  %v326_v24 = vadd.f32 1e-05, %v322_v16 }
 0x11e   :  { %v310_v11 = vadd.f32 %v309_v8, %v295_v5  ;;  %v315_v12 = vrot.slane %v296_v9, 4  ;;  %1479 = vrsqrt.f32 %v326_v24 }
 0x11f   :  { %1481 = vrsqrt.f32 %v325_v27 }
 0x120   :  { %v311_v14 = vrot.slane %v310_v11, 2  ;;  %v316_v15 = vadd.f32 %v315_v12, %v296_v9 }
 0x122   :  { %v312_v17 = vadd.f32 %v311_v14, %v310_v11  ;;  %v317_v18 = vrot.slane %v316_v15, 2 }
 0x124   :  { %v313_v22 = vrot.slane %v312_v17, 1  ;;  %v318_v23 = vadd.f32 %v317_v18, %v316_v15 }
 0x126   :  { %v314_v25 = vadd.f32 %v313_v22, %v312_v17  ;;  %v319_v26 = vrot.slane %v318_v23, 1 }
 0x128   :  { %v323_v28 = vmul.f32 0.125, %v314_v25  ;;  %v320_v29 = vadd.f32 %v319_v26, %v318_v23 }
 0x12a   :  { %v327_v30 = vadd.f32 1e-05, %v323_v28  ;;  %v324_v31 = vmul.f32 0.125, %v320_v29  ;;  %v1464_v28 = vld [vmem:[#allocation6 + $0x38] sm:$0xff]   ;;  %v1465_v29 = vld [vmem:[#allocation6 + $0x70] sm:$0xff]  }
 0x12b   :  { %v1480_v41 = vpop.eup %1479 }
 0x12c   :  { %v328_v32 = vadd.f32 1e-05, %v324_v31  ;;  %1483 = vrsqrt.f32 %v327_v30  ;;  %v1482_v43 = vpop.eup %1481  ;;  %v1466_v30 = vld [vmem:[#allocation6 + $0x30] sm:$0xff]   ;;  %v1467_v31 = vld [vmem:[#allocation6 + $0x68] sm:$0xff]  }
 0x12d   :  { %v337_v45 = vcombine.low %v1482_v43, %v1480_v41  ;;  %v1474_v41 = vld [vmem:[#allocation6 + $0x10] sm:$0xff]   ;;  %v1475_v43 = vld [vmem:[#allocation6 + $0x48] sm:$0xff]  }
 0x12e   :  { %1485 = vrsqrt.f32 %v328_v32  ;;  %v1468_v32 = vld [vmem:[#allocation6 + $0x28] sm:$0xff]  }
 0x12f   :  { %v345_v49 = vrot.slane %v337_v45, %v1656_v46  ;;  %v1477_v45 = vld [vmem:[#allocation6 + $0x40] sm:$0xff]  }
 0x139   :  { %v1484_v44 = vpop.eup %1483 }
 0x13b   :  { %v1486_v47 = vpop.eup %1485 }
 0x13c   :  { %v338_v48 = vcombine.low %v1484_v44, %v1486_v47  ;;  %v1476_v44 = vld [vmem:[#allocation6 + $0x8] sm:$0xff]   ;;  %v1478_v47 = vld [vmem:[#allocation6] sm:$0xff]  }
 0x13e   :  { %v352_v50 = vrot.slane %v338_v48, %v1656_v46 }
 0x140   :  { %v353_v51 = vcombine.low %v345_v49, %v352_v50 }
 0x142   :  { %v360_v54 = vrot.slane %v353_v51, %v1656_v46 }
 0x144   :  { %v362_v58 = vmul.f32 %v360_v54, %v258_v52 }
 0x146   :  { %v375_v59 = vrot.slane %v362_v58, %v374_v53  ;;  %v379_v60 = vrot.slane %v362_v58, %v378_v55  ;;  %v367_v61 = vrot.slane %v362_v58, %v1664_v56  ;;  %v371_v62 = vrot.slane %v362_v58, %v1666_v57 }
 0x148   :  { %v386_v0 = vmul.f32 %v375_v59, %v287_v63  ;;  %v387_v1 = vmul.f32 %v379_v60, %v288_v3  ;;  %v384_v2 = vmul.f32 %v367_v61, %v1638_v34  ;;  %v385_v4 = vmul.f32 %v371_v62, %v1642_v37 }
 0x149   :  { %v421_v63 = vmul.f32 %v379_v60, %v1649_v42  ;;  %v419_v34 = vmul.f32 %v371_v62, %v1633_v21  ;;  %v418_v37 = vmul.f32 %v367_v61, %v1630_v19  ;;  %v420_v3 = vmul.f32 %v375_v59, %v1644_v38  ;;  %v1463_v38 = vld [vmem:[#allocation6 + $0x78] sm:$0xff]  }
 0x14a   :  { %v393_v5 = vcombine.low %v386_v0, %v387_v1  ;;  %v392_v6 = vcombine.low %v384_v2, %v385_v4  ;;  %1310 = vmatprep.subr.bf16.mxu0 %v1463_v38 }
 0x14c   :  { %v407_v7 = vrot.slane %v393_v5, %v1656_v46  ;;  %v400_v8 = vrot.slane %v392_v6, %v1656_v46 }
 0x14e   :  { %v408_v9 = vcombine.low %v400_v8, %v407_v7 }
 0x150   :  { %v415_v11 = vrot.slane %v408_v9, %v1656_v46 }
 0x152   :  { %v417_v12 = vsub.f32 %v259_v10, %v415_v11 }
 0x154   :  { %v430_v13 = vrot.slane %v417_v12, %v1666_v57  ;;  %v438_v14 = vrot.slane %v417_v12, %v378_v55  ;;  %v426_v15 = vrot.slane %v417_v12, %v1664_v56  ;;  %v434_v16 = vrot.slane %v417_v12, %v374_v53 }
 0x156   :  { %v444_v17 = vadd.f32 %v430_v13, %v419_v34  ;;  %v446_v18 = vadd.f32 %v438_v14, %v421_v63  ;;  %v443_v20 = vadd.f32 %v426_v15, %v418_v37  ;;  %v445_v22 = vadd.f32 %v434_v16, %v420_v3 }
 0x158   :  { %v448_v23 = vmax.f32 %v444_v17, 0.0  ;;  %v450_v24 = vmax.f32 %v446_v18, 0.0  ;;  %v447_v25 = vmax.f32 %v443_v20, 0.0  ;;  %v449_v42 = vmax.f32 %v445_v22, 0.0 }
 0x15a   :  { %v452_v26 = vpack.c.bf16 %v448_v23, %v448_v23  ;;  %v454_v21 = vpack.c.bf16 %v450_v24, %v450_v24  ;;  %v451_v27 = vpack.c.bf16 %v447_v25, %v447_v25  ;;  %v453_v19 = vpack.c.bf16 %v449_v42, %v449_v42 }
 0x15c   :  { %871 = vmatprep.mubr.bf16.mxu0 %v452_v26  ;;  %912 = vmatprep.mubr.bf16.mxu1 %v454_v21 }
 0x15d   :  { %872 = vmatmul.mubr.bf16.vlgmr.msra.gmra.mxu0 %v451_v27  ;;  %913 = vmatmul.mubr.bf16.vlgmr.msra.gmra.mxu1 %v453_v19 }
 0x15e   :  { %1311 = vmatpush3.bf16.msra.mxu0 %v1464_v28 }
 0x15f   :  { %1312 = vmatprep.subr.bf16.mxu0 %v1465_v29 }
 0x162   :  { %1313 = vmatpush3.bf16.msra.mxu0 %v1466_v30  ;;  %v921_v30 = vld [vmem:[%s1709_s5] sm:$0x3] }
 0x163   :  { %1314 = vmatprep.subr.bf16.mxu0 %v1467_v31 }
 0x166   :  { %1315 = vmatpush3.bf16.msra.mxu0 %v1468_v32 }
 0x167   :  { %1316 = vmatprep.subr.bf16.mxu0 %v1469_v33 }
 0x16a   :  { %1317 = vmatpush3.bf16.msra.mxu0 %v1470_v35 }
 0x16b   :  { %1318 = vmatprep.subr.bf16.mxu0 %v1471_v36 }
 0x16e   :  { %1319 = vmatpush3.bf16.msra.mxu0 %v1472_v39 }
 0x16f   :  { %1320 = vmatprep.subr.bf16.mxu0 %v1473_v40 }
 0x172   :  { %1321 = vmatpush3.bf16.msra.mxu0 %v1474_v41 }
 0x173   :  { %1322 = vmatprep.subr.bf16.mxu0 %v1475_v43  ;;  %v922_v43 = vld [vmem:[%s1710_s6] sm:$0x3] }
 0x176   :  { %1323 = vmatpush3.bf16.msra.mxu0 %v1476_v44 }
 0x177   :  { %1324 = vmatprep.subr.bf16.mxu0 %v1477_v45 }
 0x17a   :  { %1325 = vmatpush3.bf16.msra.mxu0 %v1478_v47 }
 0x21d   :  { %v873_v48 = vpop.f32.mrf.mxu0  ;;  %v914_v49 = vpop.f32.mrf.mxu1 }
 0x21e   :  { %v915_v50 = vadd.f32 %v914_v49, %v873_v48 }
 0x21f   :  { %v875_v51 = vpop.f32.mrf.mxu0  ;;  %v916_v52 = vpop.f32.mrf.mxu1 }
 0x220   :  { %v923_v53 = vrot.slane %v915_v50, 4  ;;  %v917_v54 = vadd.f32 %v916_v52, %v875_v51 }
 0x221   :  { %v877_v55 = vpop.f32.mrf.mxu0  ;;  %v918_v58 = vpop.f32.mrf.mxu1 }
 0x222   :  { %v924_v59 = vadd.f32 %v923_v53, %v915_v50  ;;  %v929_v60 = vrot.slane %v917_v54, 4 }
 0x223   :  { %v878_v61 = vpop.f32.mrf.mxu0  ;;  %v919_v62 = vpop.f32.mrf.mxu1 }
 0x224   :  { %v925_v0 = vrot.slane %v924_v59, 2  ;;  %v930_v1 = vadd.f32 %v929_v60, %v917_v54 }
 0x226   :  { %v926_v2 = vadd.f32 %v925_v0, %v924_v59  ;;  %v931_v4 = vrot.slane %v930_v1, 2 }
 0x228   :  { %v927_v5 = vrot.slane %v926_v2, 1  ;;  %v932_v6 = vadd.f32 %v931_v4, %v930_v1 }
 0x22a   :  { %v928_v7 = vadd.f32 %v927_v5, %v926_v2  ;;  %v933_v8 = vrot.slane %v932_v6, 1 }
 0x22c   :  { %v935_v9 = vmul.f32 0.125, %v928_v7  ;;  %v934_v10 = vadd.f32 %v933_v8, %v932_v6 }
 0x22e   :  { %v937_v11 = vsub.f32 %v915_v50, %v935_v9  ;;  %v936_v12 = vmul.f32 0.125, %v934_v10 }
 0x230   :  { %v939_v63 = vmul.f32 %v937_v11, %v937_v11  ;;  %v938_v34 = vsub.f32 %v917_v54, %v936_v12 }
 0x232   :  { %v941_v37 = vrot.slane %v939_v63, 4  ;;  %v940_v3 = vmul.f32 %v938_v34, %v938_v34 }
 0x234   :  { %v942_v13 = vadd.f32 %v941_v37, %v939_v63  ;;  %v947_v14 = vrot.slane %v940_v3, 4 }
 0x236   :  { %v943_v15 = vrot.slane %v942_v13, 2  ;;  %v948_v16 = vadd.f32 %v947_v14, %v940_v3 }
 0x238   :  { %v944_v17 = vadd.f32 %v943_v15, %v942_v13  ;;  %v949_v18 = vrot.slane %v948_v16, 2 }
 0x23a   :  { %v945_v20 = vrot.slane %v944_v17, 1  ;;  %v950_v22 = vadd.f32 %v949_v18, %v948_v16 }
 0x23c   :  { %v946_v23 = vadd.f32 %v945_v20, %v944_v17  ;;  %v951_v24 = vrot.slane %v950_v22, 1 }
 0x23e   :  { %v953_v25 = vmul.f32 0.125, %v946_v23  ;;  %v952_v42 = vadd.f32 %v951_v24, %v950_v22 }
 0x240   :  { %v955_v26 = vadd.f32 1e-05, %v953_v25  ;;  %v954_v21 = vmul.f32 0.125, %v952_v42 }
 0x242   :  { %v956_v27 = vadd.f32 1e-05, %v954_v21  ;;  %1487 = vrsqrt.f32 %v955_v26 }
 0x244   :  { %1489 = vrsqrt.f32 %v956_v27 }
 0x24f   :  { %v1488_v19 = vpop.eup %1487 }
 0x251   :  { %v1490_v38 = vpop.eup %1489 }
 0x252   :  { %v961_v28 = vcombine.low %v1488_v19, %v1490_v38 }
 0x254   :  { %v968_v29 = vrot.slane %v961_v28, %v1656_v46 }
 0x256   :  { %v975_v31 = vrot.slane %v968_v29, %v1656_v46 }
 0x258   :  { %v977_v32 = vmul.f32 %v975_v31, %v921_v30 }
 0x25a   :  { %v982_v33 = vrot.slane %v977_v32, %v1664_v56  ;;  %v986_v35 = vrot.slane %v977_v32, %v1666_v57 }
 0x25c   :  { %v989_v36 = vmul.f32 %v982_v33, %v935_v9  ;;  %v990_v39 = vmul.f32 %v986_v35, %v936_v12  ;;  %v1011_v47 = vmul.f32 %v986_v35, %v917_v54  ;;  %v1010_v49 = vmul.f32 %v982_v33, %v915_v50 }
 0x25e   :  { %v993_v40 = vcombine.low %v989_v36, %v990_v39 }
 0x260   :  { %v1000_v41 = vrot.slane %v993_v40, %v1656_v46 }
 0x262   :  { %v1007_v44 = vrot.slane %v1000_v41, %v1656_v46  ;;  %v1293_v46 = vld [vmem:[%s1712_s8] ss:$0 sm:$0xff] }
 0x264   :  { %v1009_v45 = vsub.f32 %v922_v43, %v1007_v44 }
 0x266   :  { %v1020_v48 = vrot.slane %v1009_v45, %v1666_v57  ;;  %v1016_v51 = vrot.slane %v1009_v45, %v1664_v56 }
 0x268   :  { %v1024_v52 = vadd.f32 %v1020_v48, %v1011_v47  ;;  %v1023_v53 = vadd.f32 %v1016_v51, %v1010_v49 }
 0x26a   :  { %v1026_v55 = vmax.f32 %v1024_v52, 0.0  ;;  %v1025_v58 = vmax.f32 %v1023_v53, 0.0 }
 0x26c   :  { %v1028_v59 = vpack.c.bf16 %v1026_v55, %v1026_v55  ;;  %v1027_v60 = vpack.c.bf16 %v1025_v58, %v1025_v58 }
 0x26e   :  { %1196 = vmatprep.mubr.bf16.mxu0 %v1028_v59 }
 0x26f   :  { %1197 = vmatmul.mubr.bf16.vlgmr.msra.gmra.mxu0 %v1027_v60 }
 0x32f   :  { %v1326_v61 = vpop.f32.mrf.mxu0 }
 0x331   :  { %v1327_v62 = vpop.f32.mrf.mxu0 }
 0x332   :  { %v1328_v54 = vadd.f32 %v1327_v62, %v1326_v61 }
 0x333   :  { %v1329_v0 = vpop.f32.mrf.mxu0 }
 0x334   :  { %v1199_v57 = vadd.f32 %v1328_v54, %v1293_v46 }
 0x335   :  { %v1330_v50 = vpop.f32.mrf.mxu0 }
 0x336   :  { %1204 = vst [vmem:[%s1713_s9] sm:$0xff] %v1199_v57 }
 0x337   :  { %1209 = vsyncpa [#allocation3], 1 }
 0x338   :  { %1210 = vsyncpa [#allocation5], 1 }

// kernel: custom-call.22
= control target key start
LH: loop header
LB: loop body
LE: loop exit
PB: predicated region body
PF: predicated region fallthrough
CT: control target
= control target key end

     0   :  { %s1724_s30 = smov 0   ;;  %s1726_s10 = smov 0   ;;  %s2050_s0 = inlined_call_operand.vmem [shape: f32[8,2,2], index: 0, kind: input, shape index: {}]   ;;  %s2051_s1 = inlined_call_operand.vmem [shape: f32[8,2,2], index: 1, kind: input, shape index: {}]   ;;  %s2052_s2 = inlined_call_operand.vmem [shape: f32[8,2,2], index: 2, kind: input, shape index: {}]   ;;  %s2053_s3 = inlined_call_operand.vmem [shape: f32[8,2,2], index: 3, kind: input, shape index: {}]   ;;  %s2054_s4 = inlined_call_operand.vmem [shape: f32[8,2], index: 4, kind: output, shape index: {0}]   ;;  %s2055_s5 = inlined_call_operand.vmem [shape: f32[8,2], index: 5, kind: output, shape index: {1}]   ;;  %s2056_s6 = inlined_call_operand.vmem [shape: f32[8,2,2], index: 6, kind: output, shape index: {2}]   ;;  %s2057_s7 = inlined_call_operand.vmem [shape: f32[8,2,2], index: 7, kind: output, shape index: {3}]   ;;  %s2058_s8 = inlined_call_operand.vmem [shape: f32[8,2,2], index: 8, kind: output, shape index: {4}]   ;;  %s2059_s9 = inlined_call_operand.vmem [shape: f32[8,2,2], index: 9, kind: output, shape index: {5}]  }
   0x1   :  { %s1728_s11 = smov 0  }
   0x2 LB: > { %s1740_s12 = sadd.s32 4294967295, %s1661_s11   ;;  %s1743_s13 = sadd.s32 1, %s1661_s11   ;;  %s1661_s11 = sphi %s1728_s11, %s2078_s11   ;;  %s1657_s10 = sphi %s1726_s10, %s2077_s10   ;;  %s1653_s30 = sphi %s1724_s30, %s2076_s30  }
   0x3   : > { %s20_s14 = sshrl.u32 %s1661_s11, 3  ;;  %s21_s15 = sshrl.u32 %s1743_s13, 3 }
   0x4   : > { %s22_s16 = ssub.s32 %s20_s14, %s21_s15  ;;  %s25_s17 = sadd.s32 1, %s1657_s10 }
   0x5   : > { %p23_p0 = scmp.eq.s32.totalorder %s22_s16, 0  ;;  %p35_p1 = scmp.ne.s32.totalorder %s1657_s10, %s1653_s30 }
   0x6   : > { %p36_p2 = scmp.eq.s32.totalorder %s1740_s12, 7  ;;  %p1522_p4 = scmp.ge.s32.totalorder %s1661_s11, 8 }
   0x7   : > { %s1752_s18 = scalar_select %p23_p0, %s1657_s10, %s25_s17  }
   0x8   : > { %p1754_p3 = por %p36_p2, %p35_p1  ;;  %86 = sbr.rel (%p1522_p4) target bundleno = 18 (0x12), region = 16 }
   0x9   : > { %2060 = sst [smem:[#allocation31_spill]] %s1752_s18  ;;  %s88_s20 = sand.u32 (!%p1522_p4), 1, %s1661_s11  }
   0xa   : > { %s1524_s21 = sshll.u32 (!%p1522_p4), %s1661_s11, 1  ;;  %s1523_s22 = sshll.u32 (!%p1522_p4), %s88_s20, 1 }
   0xb   : > { %s92_s25 = scalar_lea.vmem (!%p1522_p4), %s2050_s0, %s1524_s21  ;;  %s90_s26 = scalar_lea.vmem (!%p1522_p4), [#allocation1], %s1523_s22 }
   0xc   : > { %s131_s29 = scalar_lea.vmem (!%p1522_p4), %s2051_s1, %s1524_s21  ;;  %s170_s16 = scalar_lea.vmem (!%p1522_p4), %s2052_s2, %s1524_s21 }
   0xd   : > { %v109_v0 = vld [vmem:[%s92_s25] sm:$0x3]  ;;  %s129_s17 = scalar_lea.vmem [#allocation3], %s1523_s22  ;;  %s209_s23 = scalar_lea.vmem %s2053_s3, %s1524_s21 }
   0xe   : > { %110 = vst [vmem:[%s90_s26] sm:$0x3] %v109_v0  ;;  %v148_v1 = vld [vmem:[%s131_s29] sm:$0x3]  ;;  %s168_s24 = scalar_lea.vmem [#allocation5], %s1523_s22  ;;  %s207_s25 = scalar_lea.vmem [#allocation7], %s1523_s22 }
   0xf   : > { %149 = vst [vmem:[%s129_s17] sm:$0x3] %v148_v1  ;;  %v187_v2 = vld [vmem:[%s170_s16] sm:$0x3] }
  0x10   : > { %188 = vst [vmem:[%s168_s24] sm:$0x3] %v187_v2  ;;  %v226_v3 = vld [vmem:[%s209_s23] sm:$0x3] }
  0x11   : > { %227 = vst [vmem:[%s207_s25] sm:$0x3] %v226_v3 }
  0x12 PF: > { %p1531_p5 = scmp.ge.s32.totalorder %s1661_s11, 1  ;;  %p244_p6 = scmp.lt.s32.totalorder %s1661_s11, 9 }
  0x14   : > { %p245_p7 = pnand %p1531_p5, %p244_p6 }
  0x16   : > { %248 = sbr.rel (%p245_p7) target bundleno = 986 (0x3da), region = 140 }
  0x1b   : > { %s267_s26 = sand.u32 1, %s1740_s12   ;;  %s285_s27 = sand.u32 1, %s1653_s30   ;;  %v349_v4 = vlaneseq  ;;  %v1671_v5 = vmov 0.0  }
  0x1c   : > { %s1777_s28 = sshll.u32 %s267_s26, 1  ;;  %s1779_s18 = sshll.u32 %s285_s27, 3  ;;  %344 = vst [vmem:[#allocation10] sm:$0xff] %v1671_v5  ;;  %345 = vst [vmem:[#allocation12] sm:$0xff] %v1671_v5 }
  0x1d   : > { %346 = vst [vmem:[#allocation14] sm:$0xff] %v1671_v5  ;;  %347 = vst [vmem:[#allocation16] sm:$0xff] %v1671_v5  ;;  %v1781_v6 = vand.u32 127, %v349_v4  ;;  %v1783_v7 = vshrl.u32 %v349_v4, 7  ;;  %s269_s11 = scalar_lea.vmem [#allocation1], %s1777_s28  ;;  %s273_s30 = scalar_lea.vmem [#allocation3], %s1777_s28 }
  0x1e   : > { %v313_v8 = vld [vmem:[%s269_s11] sm:$0x3]  ;;  %v318_v9 = vld [vmem:[%s273_s30] sm:$0x3]  ;;  %s277_s21 = scalar_lea.vmem [#allocation5], %s1777_s28  ;;  %s281_s22 = scalar_lea.vmem [#allocation7], %s1777_s28 }
  0x1f   : > { %314 = vst [vmem:[#allocation0] sm:$0x3] %v313_v8  ;;  %319 = vst [vmem:[#allocation2] sm:$0x3] %v318_v9  ;;  %v323_v10 = vld [vmem:[%s277_s21] sm:$0x3]  ;;  %v351_v6 = vmov %v1781_v6  ;;  %v354_v7 = vmov %v1783_v7 }
  0x20   : > { %v328_v11 = vld [vmem:[%s281_s22] sm:$0x3]  ;;  %324 = vst [vmem:[#allocation4] sm:$0x3] %v323_v10  ;;  %v364_v6 = vmov %v1781_v6  ;;  %v367_v7 = vmov %v1783_v7  ;;  %s332_s29 = smov [#allocation18]  ;;  %s335_s14 = smov [#allocation19]  ;;  %vm358_vm0 = vcmp.eq.s32.totalorder %v354_v7, %v351_v6 }
  0x21   : > { %329 = vst [vmem:[#allocation6] sm:$0x3] %v328_v11  ;;  %vm371_vm1 = vcmp.eq.s32.totalorder %v367_v7, %v364_v6  ;;  %s348_s15 = smov [#allocation10]  ;;  %s361_s16 = smov [#allocation16]  ;;  %vm1411_vm2 = vcmp.lt.s32.totalorder %v1781_v6, 2  ;;  %v1403_v6 = vmov %v1781_v6  ;;  %v1406_v7 = vmov %v1783_v7 }
  0x22   : > { %s338_s17 = smov [#allocation20]  ;;  %s341_s20 = smov [#allocation21]  ;;  %vm1416_vm3 = vcmp.eq.s32.totalorder %v1406_v7, %v1403_v6  ;;  %v1454_v6 = vmov %v1781_v6  ;;  %v1423_v7 = vmov %v1783_v7 }
  0x23   : > { %v355_v12 = vld [vmem:[%s348_s15] sm:$0x3]  ;;  %s1407_s30 = smov [#allocation18]  ;;  %s1424_s21 = smov [#allocation19]  ;;  %v1420_v6 = vmov %v1781_v6  ;;  %v1457_v7 = vmov %v1783_v7 }
  0x24   : > { %v368_v13 = vld [vmem:[%s361_s16] sm:$0x3]  ;;  %v359_v16 = vsel %vm358_vm0, 1.0, %v355_v12  ;;  %s1441_s22 = smov [#allocation20]  ;;  %v1437_v6 = vmov %v1781_v6  ;;  %v1440_v7 = vmov %v1783_v7  ;;  %vm1467_vm4 = vcmp.eq.s32.totalorder %v1457_v7, %v1454_v6 }
  0x25   : > { %v372_v17 = vsel %vm371_vm1, 1.0, %v368_v13  ;;  %360 = vst [vmem:[%s348_s15] sm:$0x3] %v359_v16 }
  0x26   : > { %v333_v14 = vld [vmem:[#allocation0] sm:$0xff]  ;;  %v336_v15 = vld [vmem:[#allocation2] sm:$0xff]  ;;  %373 = vst [vmem:[%s361_s16] sm:$0x3] %v372_v17 }
  0x27   : > { %334 = vst [vmem:[%s332_s29] sm:$0xff] %v333_v14  ;;  %337 = vst [vmem:[%s335_s14] sm:$0xff] %v336_v15  ;;  %v339_v18 = vld [vmem:[#allocation4] sm:$0xff]  ;;  %s1458_s29 = smov [#allocation21] }
  0x28   : > { %v342_v19 = vld [vmem:[#allocation6] sm:$0xff]  ;;  %340 = vst [vmem:[%s338_s17] sm:$0xff] %v339_v18 }
  0x29   : > { %343 = vst [vmem:[%s341_s20] sm:$0xff] %v342_v19 }
  0x2e   : > { %v1413_v20 = vld [vmem:[%s1407_s30] sm:$0x3] }
  0x2f   : > { %v1430_v21 = vld [vmem:[%s1424_s21] sm:$0x3]  ;;  %v1414_v22 = vsel %vm1411_vm2, %v1413_v20, 0.0 }
  0x30   : > { %v1431_v23 = vsel %vm1411_vm2, %v1430_v21, 0.0  ;;  %v1447_v24 = vld [vmem:[%s1441_s22] sm:$0x3]  ;;  %v1415_v26 = vmul.f32 %v1414_v22, %v1414_v22 }
  0x31   : > { %v1464_v25 = vld [vmem:[%s1458_s29] sm:$0x3]  ;;  %v1432_v27 = vmul.f32 %v1431_v23, %v1431_v23  ;;  %v1448_v28 = vsel %vm1411_vm2, %v1447_v24, 0.0 }
  0x32   : > { %v1465_v29 = vsel %vm1411_vm2, %v1464_v25, 0.0  ;;  %v1449_v30 = vmul.f32 %v1448_v28, %v1448_v28  ;;  %v1417_v33 = vsel %vm1416_vm3, 0.0, %v1415_v26 }
  0x33   : > { %v1434_v31 = vadd.f32 %v1432_v27, %v1415_v26  ;;  %v1466_v32 = vmul.f32 %v1465_v29, %v1465_v29  ;;  %v1433_v34 = vadd.f32 %v1432_v27, %v1417_v33 }
  0x35   : > { %v1451_v35 = vadd.f32 %v1449_v30, %v1434_v31  ;;  %v1450_v36 = vadd.f32 %v1449_v30, %v1433_v34  ;;  %v1468_v37 = vsel %vm1467_vm4, 0.0, %v1466_v32 }
  0x37   : > { %v1470_v38 = vadd.f32 %v1466_v32, %v1451_v35  ;;  %v1469_v39 = vadd.f32 %v1468_v37, %v1450_v36 }
  0x39   : > { %1471 = vadd.xlane.f32.xlu0 %v1470_v38 }
  0x3d   : > { %1479 = vadd.xlane.f32.xlu0 %v1469_v39 }
  0xc2   : > { %v1472_v40 = vpop.xlane.xlu0 %1471 }
  0xc3   : > { %v1473_v41 = vrot.slane %v1472_v40, 4 }
  0xc5   : > { %v1474_v42 = vadd.f32 %v1473_v41, %v1472_v40 }
  0xc6   : > { %v1480_v43 = vpop.xlane.xlu0 %1479 }
  0xc7   : > { %v1475_v44 = vrot.slane %v1474_v42, 2  ;;  %v1481_v45 = vrot.slane %v1480_v43, 4 }
  0xc9   : > { %v1482_v46 = vadd.f32 %v1481_v45, %v1480_v43  ;;  %v1476_v47 = vadd.f32 %v1475_v44, %v1474_v42 }
  0xcb   : > { %v1483_v48 = vrot.slane %v1482_v46, 2  ;;  %v1477_v50 = vrot.slane %v1476_v47, 1 }
  0xcd   : > { %v1484_v49 = vadd.f32 %v1483_v48, %v1482_v46  ;;  %v1478_v53 = vadd.f32 %v1477_v50, %v1476_v47 }
  0xcf   : > { %v1485_v51 = vrot.slane %v1484_v49, 1 }
  0xd1   : > { %v1486_v52 = vadd.f32 %v1485_v51, %v1484_v49 }
  0xd3   : > { %1572 = vpush %v1486_v52 }
  0xd4   : > { %1574 = vpush %v1478_v53 }
 0x104   : > { %s1573_s14 = spop %1572 }
 0x105   : > { %s1575_s15 = spop %1574 }
 0x106   : > { %s1489_s16 = smul.f32 1e-10, %s1575_s15 }
 0x108   : > { %p1490_p8 = scmp.le.f32.partialorder %s1573_s14, %s1489_s16 }
 0x109   : > { %s1817_s17 = smov (!%p1490_p8), 0  }
 0x10a   : > { %1493 = sbr.rel (%p1490_p8) target bundleno = 948 (0x3b4), region = 475 }
 0x10f LB: >> { %s1822_s20 = smov 0   ;;  %s1665_s17 = sphi %s1817_s17, %s2062_s17  }
 0x110 LB: >>> { %s478_s30 = smov [#allocation18]  ;;  %v482_v6 = vmov %v1781_v6  ;;  %v485_v7 = vmov %v1783_v7  ;;  %s498_s21 = smov [#allocation19]  ;;  %vm801_vm14 = vcmp.eq.s32.totalorder %v1783_v7, 0  ;;  %vm813_vm15 = vcmp.eq.s32.totalorder %v1783_v7, 1  ;;  %s1669_s20 = sphi %s1822_s20, %s477_s20  }
 0x111   : >>> { %v502_v6 = vmov %v1781_v6  ;;  %v505_v7 = vmov %v1783_v7  ;;  %v486_v54 = vld [vmem:[%s478_s30] sm:$0x3]  ;;  %vm489_vm5 = vcmp.eq.s32.totalorder %v485_v7, %v482_v6  ;;  %s518_s22 = smov [#allocation21]  ;;  %s479_s29 = smov [#allocation22] }
 0x112   : >>> { %vm509_vm6 = vcmp.eq.s32.totalorder %v505_v7, %v502_v6  ;;  %v522_v6 = vmov %v1781_v6  ;;  %v525_v7 = vmov %v1783_v7  ;;  %v490_v55 = vsel %vm489_vm5, %v486_v54, 0.0  ;;  %v506_v56 = vld [vmem:[%s498_s21] sm:$0x3]  ;;  %s499_s14 = smov [#allocation23]  ;;  %s519_s15 = smov [#allocation24] }
 0x113   : >>> { %vm529_vm7 = vcmp.eq.s32.totalorder %v525_v7, %v522_v6  ;;  %v491_v57 = vrot.slane %v490_v55, 4  ;;  %v510_v58 = vsel %vm509_vm6, %v506_v56, 0.0  ;;  %v526_v59 = vld [vmem:[%s518_s22] sm:$0x3]  ;;  %s542_s16 = smov [#allocation23]  ;;  %s540_s30 = smov [#allocation22]  ;;  %v591_v6 = vmov %v1781_v6 }
 0x114   : >>> { %v511_v60 = vrot.slane %v510_v58, 4  ;;  %v530_v61 = vsel %vm529_vm7, %v526_v59, 0.0  ;;  %s544_s21 = smov [#allocation24]  ;;  %s579_s22 = smov [#allocation25]  ;;  %v594_v7 = vmov %v1783_v7  ;;  %v606_v6 = vmov %v1781_v6 }
 0x115   : >>> { %v492_v62 = vadd.f32 %v491_v57, %v490_v55  ;;  %v531_v63 = vrot.slane %v530_v61, 4  ;;  %v609_v7 = vmov %v1783_v7  ;;  %vm596_vm12 = vcmp.eq.s32.totalorder %v594_v7, %v591_v6  ;;  %s1841_s24 = smov [#allocation20]  ;;  %s1847_s23 = smov [#allocation12] }
 0x116   : >>> { %v512_v0 = vadd.f32 %v511_v60, %v510_v58  ;;  %vm611_vm13 = vcmp.eq.s32.totalorder %v609_v7, %v606_v6  ;;  %s841_s11 = smov [#allocation29]  ;;  %s1853_s27 = smov [#allocation16]  ;;  %v627_v55 = vld [vmem:[%s1841_s24] sm:$0x3]  ;;  %v704_v6 = vmov %v1781_v6  ;;  %v707_v7 = vmov %v1783_v7 }
 0x117   : >>> { %v493_v1 = vrot.slane %v492_v62, 2  ;;  %v532_v2 = vadd.f32 %v531_v63, %v530_v61  ;;  %v850_v58 = vld [vmem:[%s1847_s23] sm:$0x3]  ;;  %s619_s26 = smov [#allocation30]  ;;  %s843_s25 = smov [#allocation30]  ;;  %v718_v6 = vmov %v1781_v6  ;;  %v721_v7 = vmov %v1783_v7 }
 0x118   : >>> { %v513_v3 = vrot.slane %v512_v0, 2  ;;  %v852_v61 = vld [vmem:[%s1853_s27] sm:$0x3]  ;;  %vm711_vm0 = vcmp.eq.s32.totalorder %v707_v7, %v704_v6  ;;  %v677_v6 = vmov %v1781_v6  ;;  %v680_v7 = vmov %v1783_v7  ;;  %s477_s20 = sadd.s32 1, %s1669_s20  }
 0x119   : >>> { %v494_v4 = vadd.f32 %v493_v1, %v492_v62  ;;  %v533_v5 = vrot.slane %v532_v2, 2  ;;  %v691_v6 = vmov %v1781_v6  ;;  %v694_v7 = vmov %v1783_v7  ;;  %p474_p9 = scmp.ge.s32.totalorder %s477_s20, 3  }
 0x11a   : >>> { %v514_v8 = vadd.f32 %v513_v3, %v512_v0  ;;  %vm726_vm1 = vcmp.eq.s32.totalorder %v721_v7, %v718_v6  ;;  %vm685_vm3 = vcmp.eq.s32.totalorder %v680_v7, %v677_v6  ;;  %vm698_vm4 = vcmp.eq.s32.totalorder %v694_v7, %v691_v6 }
 0x11b   : >>> { %v495_v9 = vrot.slane %v494_v4, 1  ;;  %v534_v10 = vadd.f32 %v533_v5, %v532_v2  ;;  %vm740_vm5 = vcmp.eq.s32.totalorder %v1781_v6, 0  ;;  %vm744_vm6 = vcmp.eq.s32.totalorder %v1781_v6, 1 }
 0x11c   : >>> { %v515_v11 = vrot.slane %v514_v8, 1  ;;  %v378_v6 = vmov (%p474_p9), %v1781_v6  ;;  %v381_v7 = vmov (%p474_p9), %v1783_v7 }
 0x11d   : >>> { %v496_v12 = vadd.f32 %v495_v9, %v494_v4  ;;  %v535_v13 = vrot.slane %v534_v10, 1  ;;  %v431_v6 = vmov (%p474_p9), %v1781_v6  ;;  %vm393_vm7 = vcmp.eq.s32.totalorder (%p474_p9), %v381_v7, %v378_v6 }
 0x11e   : >>> { %v516_v14 = vadd.f32 %v515_v11, %v514_v8  ;;  %v434_v7 = vmov (%p474_p9), %v1783_v7  ;;  %v397_v6 = vmov (%p474_p9), %v1781_v6 }
 0x11f   : >>> { %497 = vst [vmem:[%s479_s29] sm:$0x1] %v496_v12  ;;  %v536_v15 = vadd.f32 %v535_v13, %v534_v10  ;;  %s581_s29 = smov [#allocation26]  ;;  %v400_v7 = vmov (%p474_p9), %v1783_v7  ;;  %v414_v6 = vmov (%p474_p9), %v1781_v6 }
 0x120   : >>> { %517 = vst [vmem:[%s499_s14] sm:$0x1] %v516_v14  ;;  %s538_s14 = smov [#allocation27]  ;;  %v417_v7 = vmov (%p474_p9), %v1783_v7 }
 0x121   : >>> { %537 = vst [vmem:[%s519_s15] sm:$0x1] %v536_v15  ;;  %s539_s15 = smov [#allocation28]  ;;  %s583_s14 = smov %s538_s14 }
 0x122   : >>> { %s585_s15 = smov %s539_s15 }
 0x126   : >>> { %v541_v18 = vld [vmem:[%s540_s30] sm:$0xff]  ;;  %s602_s30 = smov [#allocation28] }
 0x127   : >>> { %v543_v16 = vld [vmem:[%s542_s16] sm:$0xff]  ;;  %v564_v33 = vand.u32 2147483647, %v541_v18  ;;  %s587_s16 = smov [#allocation27] }
 0x128   : >>> { %v547_v17 = vmul.f32 2.0, %v543_v16  ;;  %v545_v19 = vld [vmem:[%s544_s21] sm:$0xff]  ;;  %v565_v36 = vand.u32 2147483647, %v543_v16  ;;  %s600_s21 = smov [#allocation29] }
 0x129   : >>> { %v546_v20 = vsub.f32 %v545_v19, %v541_v18  ;;  %v566_v34 = vand.u32 2147483647, %v545_v19 }
 0x12a   : >>> { %1623 = vrcp.f32 %v547_v17 }
 0x12b   : >>> { %v567_v35 = vmin.f32 %v564_v33, %v566_v34 }
 0x12d   : >>> { %v568_v37 = vmul.f32 1.1920929e-08, %v567_v35 }
 0x12f   : >>> { %vm569_vm11 = vcmp.le.f32.partialorder %v565_v36, %v568_v37 }
 0x137   : >>> { %v1624_v21 = vpop.eup %1623 }
 0x138   : >>> { %v549_v22 = vmul.f32 %v1624_v21, %v546_v20 }
 0x13a   : >>> { %v551_v23 = vmul.f32 %v549_v22, %v549_v22  ;;  %vm550_vm10 = vcmp.ge.f32.partialorder %v549_v22, 0.0 }
 0x13c   : >>> { %v552_v24 = vadd.f32 1.0, %v551_v23 }
 0x13e   : >>> { %1625 = vrsqrt.f32 %v552_v24  ;;  %vm555_vm8 = vcmp.eq.f32.partialorder %v552_v24, inf  ;;  %v558_v26 = vand.u32 2147483648, %v552_v24  ;;  %vm557_vm9 = vcmp.eq.f32.partialorder %v552_v24, 0.0 }
 0x14b   : >>> { %v1626_v25 = vpop.eup %1625 }
 0x14c   : >>> { %v554_v27 = vmul.f32 %v1626_v25, %v552_v24 }
 0x14e   : >>> { %v556_v28 = vsel %vm555_vm8, %v552_v24, %v554_v27  ;;  %vm446_vm8 = vcmp.eq.s32.totalorder (%p474_p9), %v434_v7, %v431_v6 }
 0x14f   : >>> { %v559_v29 = vsel %vm557_vm9, %v558_v26, %v556_v28 }
 0x150   : >>> { %v560_v30 = vxor.u32 2147483648, %v559_v29 }
 0x152   : >>> { %v561_v31 = vsel %vm550_vm10, %v559_v29, %v560_v30 }
 0x153   : >>> { %v562_v32 = vadd.f32 %v561_v31, %v549_v22 }
 0x155   : >>> { %1627 = vrcp.f32 %v562_v32 }
 0x162   : >>> { %v1628_v38 = vpop.eup %1627 }
 0x163   : >>> { %v570_v39 = vsel %vm569_vm11, 0.0, %v1628_v38 }
 0x164   : >>> { %v571_v40 = vmul.f32 %v570_v39, %v570_v39  ;;  %v575_v41 = vmul.f32 %v570_v39, %v543_v16 }
 0x166   : >>> { %v572_v42 = vadd.f32 1.0, %v571_v40  ;;  %v576_v43 = vsub.f32 %v541_v18, %v575_v41  ;;  %v578_v44 = vadd.f32 %v575_v41, %v545_v19 }
 0x168   : >>> { %1629 = vrsqrt.f32 %v572_v42  ;;  %580 = vst [vmem:[%s579_s22] sm:$0xff] %v576_v43  ;;  %582 = vst [vmem:[%s581_s29] sm:$0xff] %v578_v44  ;;  %s617_s22 = smov [#allocation29]  ;;  %s1837_s29 = smov [#allocation18] }
 0x169   : >>> { %v625_v53 = vld [vmem:[%s1837_s29] sm:$0x3] }
 0x175   : >>> { %v1630_v45 = vpop.eup %1629 }
 0x176   : >>> { %584 = vst [vmem:[%s583_s14] sm:$0xff] %v1630_v45  ;;  %v574_v46 = vmul.f32 %v1630_v45, %v570_v39  ;;  %s615_s14 = smov [#allocation30] }
 0x178   : >>> { %586 = vst [vmem:[%s585_s15] sm:$0xff] %v574_v46  ;;  %s1839_s15 = smov [#allocation19] }
 0x179   : >>> { %v626_v54 = vld [vmem:[%s1839_s15] sm:$0x3] }
 0x17d   : >>> { %v588_v47 = vld [vmem:[%s587_s16] ss:$0 sm:$0xff]  ;;  %s1843_s16 = smov [#allocation21] }
 0x17e   : >>> { %v597_v48 = vsel %vm596_vm12, %v588_v47, 0.0  ;;  %v628_v56 = vld [vmem:[%s1843_s16] sm:$0x3] }
 0x17f   : >>> { %598 = vadd.xlane.f32.xlu0 %v597_v48  ;;  %v603_v49 = vld [vmem:[%s602_s30] ss:$0 sm:$0xff]  ;;  %s1845_s30 = smov [#allocation10] }
 0x180   : >>> { %v612_v50 = vsel %vm611_vm13, %v603_v49, 0.0  ;;  %v849_v57 = vld [vmem:[%s1845_s30] sm:$0x3] }
 0x183   : >>> { %613 = vadd.xlane.f32.xlu0 %v612_v50 }
 0x208   : >>> { %v599_v51 = vpop.xlane.xlu0 %598 }
 0x209   : >>> { %601 = vst [vmem:[%s600_s21] sm:$0xff] %v599_v51  ;;  %s1849_s21 = smov [#allocation14] }
 0x20a   : >>> { %v851_v59 = vld [vmem:[%s1849_s21] sm:$0x3] }
 0x20c   : >>> { %v614_v52 = vpop.xlane.xlu0 %613 }
 0x20d   : >>> { %616 = vst [vmem:[%s615_s14] sm:$0xff] %v614_v52  ;;  %s1873_s14 = smov [#allocation21] }
 0x210   : >>> { %v618_v60 = vld [vmem:[%s617_s22] sm:$0xff]  ;;  %s1871_s22 = smov [#allocation20] }
 0x211   : >>> { %v842_v62 = vld [vmem:[%s841_s11] sm:$0xff]  ;;  %v629_v63 = vmul.f32 %v625_v53, %v618_v60  ;;  %v632_v0 = vmul.f32 %v626_v54, %v618_v60  ;;  %v636_v1 = vmul.f32 %v627_v55, %v618_v60  ;;  %v639_v2 = vmul.f32 %v628_v56, %v618_v60  ;;  %s1869_s11 = smov [#allocation10] }
 0x212   : >>> { %v853_v3 = vmul.f32 %v849_v57, %v842_v62  ;;  %v856_v4 = vmul.f32 %v850_v58, %v842_v62  ;;  %v860_v5 = vmul.f32 %v851_v59, %v842_v62  ;;  %v863_v8 = vmul.f32 %v852_v61, %v842_v62 }
 0x214   : >>> { %v620_v9 = vld [vmem:[%s619_s26] sm:$0xff]  ;;  %s647_s26 = smov [#allocation28] }
 0x215   : >>> { %v844_v10 = vld [vmem:[%s843_s25] sm:$0xff]  ;;  %v630_v11 = vmul.f32 %v627_v55, %v620_v9  ;;  %v633_v12 = vmul.f32 %v628_v56, %v620_v9  ;;  %v635_v13 = vmul.f32 %v625_v53, %v620_v9  ;;  %v638_v14 = vmul.f32 %v626_v54, %v620_v9  ;;  %s645_s25 = smov [#allocation27] }
 0x216   : >>> { %v854_v15 = vmul.f32 %v851_v59, %v844_v10  ;;  %v857_v16 = vmul.f32 %v852_v61, %v844_v10  ;;  %v859_v17 = vmul.f32 %v849_v57, %v844_v10  ;;  %v862_v18 = vmul.f32 %v850_v58, %v844_v10  ;;  %v646_v27 = vld [vmem:[%s645_s25] ss:$0 sm:$0xff]  ;;  %s674_s25 = smov [#allocation25] }
 0x217   : >>> { %v631_v19 = vsub.f32 %v629_v63, %v630_v11  ;;  %v634_v20 = vsub.f32 %v632_v0, %v633_v12  ;;  %v637_v21 = vadd.f32 %v636_v1, %v635_v13  ;;  %v640_v22 = vadd.f32 %v639_v2, %v638_v14  ;;  %v648_v28 = vld [vmem:[%s647_s26] ss:$0 sm:$0xff]  ;;  %s673_s26 = smov [#allocation18] }
 0x218   : >>> { %v855_v23 = vsub.f32 %v853_v3, %v854_v15  ;;  %v858_v24 = vsub.f32 %v856_v4, %v857_v16  ;;  %v861_v25 = vadd.f32 %v860_v5, %v859_v17  ;;  %v864_v26 = vadd.f32 %v863_v8, %v862_v18  ;;  %v681_v63 = vld [vmem:[%s674_s25] ss:$0 sm:$0xff]  ;;  %s917_s25 = sadd.s32 (%p474_p9), 1, %s1665_s17  }
 0x219   : >>> { %642 = vst [vmem:[%s1839_s15] sm:$0x3] %v634_v20  ;;  %644 = vst [vmem:[%s1843_s16] sm:$0x3] %v640_v22  ;;  %s1875_s15 = smov [#allocation18]  ;;  %s715_s16 = smov [#allocation26] }
 0x21a   : >>> { %641 = vst [vmem:[%s1837_s29] sm:$0x3] %v631_v19  ;;  %643 = vst [vmem:[%s1841_s24] sm:$0x3] %v637_v21  ;;  %s1877_s24 = smov [#allocation14]  ;;  %s1885_s29 = smov [#allocation19]  ;;  %v722_v59 = vld [vmem:[%s715_s16] ss:$0 sm:$0xff] }
 0x21b   : >>> { %865 = vst [vmem:[%s1845_s30] sm:$0x3] %v855_v23  ;;  %866 = vst [vmem:[%s1847_s23] sm:$0x3] %v858_v24  ;;  %s1879_s23 = smov [#allocation12]  ;;  %s701_s30 = smov [#allocation20] }
 0x21c   : >>> { %867 = vst [vmem:[%s1849_s21] sm:$0x3] %v861_v25  ;;  %868 = vst [vmem:[%s1853_s27] sm:$0x3] %v864_v26  ;;  %s1883_s27 = smov [#allocation16]  ;;  %s714_s21 = smov [#allocation21] }
 0x21d   : >>> { %s817_s16 = smov [#allocation19]  ;;  %p470_p10 = scmp.ge.s32.totalorder (%p474_p9), %s917_s25, 15 }
 0x21e   : >> { %s2062_s17 = smov (%p474_p9), %s917_s25 }
 0x220   : >>> { %v656_v30 = vld [vmem:[%s1873_s14] sm:$0x3] }
 0x221   : >>> { %v655_v29 = vld [vmem:[%s1871_s22] sm:$0x3]  ;;  %v664_v36 = vmul.f32 %v656_v30, %v648_v28  ;;  %v667_v42 = vmul.f32 %v656_v30, %v646_v27 }
 0x222   : >>> { %v653_v31 = vld [vmem:[%s1875_s15] sm:$0x3]  ;;  %v663_v35 = vmul.f32 %v655_v29, %v646_v27  ;;  %v666_v37 = vmul.f32 %v655_v29, %v648_v28 }
 0x223   : >>> { %v871_v32 = vld [vmem:[%s1869_s11] ss:$0 sm:$0xff]  ;;  %v1551_v34 = vld [vmem:[%s1869_s11 + $0x1] ss:$0 sm:$0xff]  ;;  %v657_v48 = vmul.f32 %v653_v31, %v646_v27  ;;  %v660_v49 = vmul.f32 %v653_v31, %v648_v28 }
 0x224   : >>> { %v1550_v33 = vld [vmem:[%s1869_s11 - $0x1] sm:$0x2]  ;;  %v1553_v40 = vld [vmem:[%s1877_s24 + $0x1] sm:$0x1]  ;;  %v665_v47 = vsub.f32 %v663_v35, %v664_v36  ;;  %v668_v53 = vadd.f32 %v667_v42, %v666_v37 }
 0x225   : >>> { %v878_v38 = vsel %vm801_vm14, %v871_v32, %v1550_v33  ;;  %v882_v39 = vld [vmem:[%s1877_s24] ss:$0 sm:$0xff]  ;;  %v890_v43 = vsel %vm813_vm15, %v1551_v34, %v1553_v40  ;;  %v1555_v45 = vld [vmem:[%s1879_s23 + $0x1] ss:$0 sm:$0xff] }
 0x226   : >>> { %v895_v41 = vld [vmem:[%s1879_s23] ss:$0 sm:$0xff]  ;;  %881 = vst [vmem:[%s1869_s11] sm:$0x3] %v878_v38  ;;  %892 = vst [vmem:[%s1877_s24] sm:$0x3] %v890_v43  ;;  %v1557_v51 = vld [vmem:[%s1883_s27 + $0x1] sm:$0x1] }
 0x227   : >>> { %v1554_v44 = vld [vmem:[%s1879_s23 - $0x1] sm:$0x2]  ;;  %1552 = vst [vmem:[%s1869_s11 + $0x1] sm:$0x1] %v882_v39  ;;  %v914_v54 = vsel %vm813_vm15, %v1555_v45, %v1557_v51  ;;  %671 = vst [vmem:[%s1871_s22] sm:$0x3] %v665_v47  ;;  %s688_s11 = smov [#allocation19] }
 0x228   : >>> { %v906_v46 = vld [vmem:[%s1883_s27] ss:$0 sm:$0xff]  ;;  %v902_v50 = vsel %vm801_vm14, %v895_v41, %v1554_v44  ;;  %672 = vst [vmem:[%s1873_s14] sm:$0x3] %v668_v53  ;;  %s1927_s22 = smov [#allocation20]  ;;  %s1672_s14 = smov 1  }
 0x229   : >>> { %v654_v52 = vld [vmem:[%s1885_s29] sm:$0x3]  ;;  %905 = vst [vmem:[%s1879_s23] sm:$0x3] %v902_v50  ;;  %916 = vst [vmem:[%s1883_s27] sm:$0x3] %v914_v54  ;;  %s730_s24 = smov [#allocation19]  ;;  %s1930_s27 = smov [#allocation21] }
 0x22a   : >>> { %v658_v55 = vmul.f32 %v654_v52, %v648_v28  ;;  %v661_v56 = vmul.f32 %v654_v52, %v646_v27  ;;  %1556 = vst [vmem:[%s1879_s23 + $0x1] sm:$0x1] %v906_v46  ;;  %s1673_s23 = smov 127  }
 0x22c   : >>> { %v659_v57 = vsub.f32 %v657_v48, %v658_v55  ;;  %v662_v58 = vadd.f32 %v661_v56, %v660_v49 }
 0x22e   : >>> { %669 = vst [vmem:[%s1875_s15] sm:$0x3] %v659_v57  ;;  %670 = vst [vmem:[%s1885_s29] sm:$0x3] %v662_v58  ;;  %v708_v60 = vld [vmem:[%s701_s30] sm:$0x3]  ;;  %s729_s15 = smov [#allocation18]  ;;  %s793_s29 = smov [#allocation18] }
 0x22f   : >>> { %v712_v61 = vsel %vm711_vm0, 0.0, %v708_v60  ;;  %v723_v62 = vld [vmem:[%s714_s21] sm:$0x3] }
 0x230   : >>> { %713 = vst [vmem:[%s701_s30] sm:$0x3] %v712_v61  ;;  %v727_v0 = vsel %vm726_vm1, %v722_v59, %v723_v62  ;;  %s794_s30 = smov [#allocation20] }
 0x231   : >>> { %728 = vst [vmem:[%s714_s21] sm:$0x3] %v727_v0  ;;  %s818_s21 = smov [#allocation21] }
 0x235   : >>> { %v682_v1 = vld [vmem:[%s673_s26] sm:$0x3] }
 0x236   : >>> { %v695_v2 = vld [vmem:[%s688_s11] sm:$0x3]  ;;  %v686_v3 = vsel %vm685_vm3, %v681_v63, %v682_v1 }
 0x237   : >>> { %v699_v4 = vsel %vm698_vm4, 0.0, %v695_v2  ;;  %687 = vst [vmem:[%s673_s26] sm:$0x3] %v686_v3  ;;  %v767_v5 = vld [vmem:[%s1927_s22] sm:$0x3]  ;;  %s382_s26 = smov (%p474_p9), [#allocation18] }
 0x238   : >>> { %700 = vst [vmem:[%s688_s11] sm:$0x3] %v699_v4  ;;  %768 = vrot.lane.b32.xlu0 %v767_v5, %s1672_s14  ;;  %v763_v11 = vld [vmem:[%s1930_s27] sm:$0x3]  ;;  %s401_s11 = smov (%p474_p9), [#allocation19] }
 0x239   : >>> { %v784_v12 = vld [vmem:[%s1930_s27] sm:$0x3] }
 0x23a   : >>> { %v766_v30 = vld [vmem:[%s1927_s22] sm:$0x3] }
 0x23e   : >>> { %v735_v8 = vld [vmem:[%s729_s15] sm:$0x3] }
 0x23f   : >>> { %736 = vrot.lane.b32.xlu1 %v735_v8, %s1672_s14  ;;  %v731_v9 = vld [vmem:[%s730_s24] sm:$0x3] }
 0x240   : >>> { %v752_v10 = vld [vmem:[%s730_s24] sm:$0x3] }
 0x241   : >>> { %v734_v18 = vld [vmem:[%s729_s15] sm:$0x3] }
 0x243   : >>> { %732 = vrot.lane.b32.xlu1 %v731_v9, %s1672_s14 }
 0x247   : >>> { %753 = vrot.lane.b32.xlu1 %v752_v10, %s1673_s23 }
 0x24b   : >>> { %764 = vrot.lane.b32.xlu1 %v763_v11, %s1672_s14  ;;  %s435_s14 = smov (%p474_p9), [#allocation21] }
 0x24f   : >>> { %785 = vrot.lane.b32.xlu1 %v784_v12, %s1673_s23 }
 0x2aa   : >>> { %v769_v20 = vpop.permute.xlu0 %768 }
 0x2ab   : >>> { %v773_v22 = vsel %vm740_vm5, %v767_v5, %v769_v20 }
 0x2b1   : >>> { %v737_v13 = vpop.permute.xlu1 %736 }
 0x2b2   : >>> { %v741_v14 = vsel %vm740_vm5, %v735_v8, %v737_v13 }
 0x2b5   : >>> { %v733_v15 = vpop.permute.xlu1 %732 }
 0x2b6   : >>> { %v745_v16 = vsel %vm744_vm6, %v733_v15, %v741_v14 }
 0x2b7   : >>> { %v751_v17 = vsel %vm1411_vm2, %v745_v16, 0.0 }
 0x2b8   : >>> { %759 = vst [vmem:[%s729_s15] sm:$0x3] %v751_v17 }
 0x2b9   : >>> { %v754_v19 = vpop.permute.xlu1 %753 }
 0x2ba   : >>> { %v758_v21 = vsel %vm744_vm6, %v734_v18, %v754_v19 }
 0x2bb   : >>> { %760 = vst [vmem:[%s730_s24] sm:$0x3] %v758_v21 }
 0x2bd   : >>> { %v765_v23 = vpop.permute.xlu1 %764 }
 0x2be   : >>> { %v777_v24 = vsel %vm744_vm6, %v765_v23, %v773_v22 }
 0x2bf   : >>> { %v795_v25 = vld [vmem:[%s793_s29] ss:$0 sm:$0xff]  ;;  %v1543_v27 = vld [vmem:[%s793_s29 + $0x1] ss:$0 sm:$0xff]  ;;  %v783_v29 = vsel %vm1411_vm2, %v777_v24, 0.0 }
 0x2c0   : >>> { %v1542_v26 = vld [vmem:[%s793_s29 - $0x1] sm:$0x2]  ;;  %791 = vst [vmem:[%s1927_s22] sm:$0x3] %v783_v29  ;;  %s418_s22 = smov (%p474_p9), [#allocation20] }
 0x2c1   : >>> { %v802_v28 = vsel %vm801_vm14, %v795_v25, %v1542_v26  ;;  %v786_v31 = vpop.permute.xlu1 %785 }
 0x2c2   : >>> { %805 = vst [vmem:[%s793_s29] sm:$0x3] %v802_v28  ;;  %v819_v32 = vld [vmem:[%s817_s16] ss:$0 sm:$0xff]  ;;  %v1547_v34 = vld [vmem:[%s817_s16 + $0x1] ss:$0 sm:$0xff]  ;;  %v790_v35 = vsel %vm744_vm6, %v766_v30, %v786_v31 }
 0x2c3   : >>> { %v1546_v33 = vld [vmem:[%s817_s16 - $0x1] sm:$0x2]  ;;  %792 = vst [vmem:[%s1930_s27] sm:$0x3] %v790_v35 }
 0x2c4   : >>> { %v826_v36 = vsel %vm801_vm14, %v819_v32, %v1546_v33 }
 0x2c5   : >>> { %829 = vst [vmem:[%s817_s16] sm:$0x3] %v826_v36 }
 0x2c7   : >>> { %v806_v37 = vld [vmem:[%s794_s30] ss:$0 sm:$0xff]  ;;  %v1545_v38 = vld [vmem:[%s794_s30 + $0x1] sm:$0x1] }
 0x2c8   : >>> { %1544 = vst [vmem:[%s793_s29 + $0x1] sm:$0x1] %v806_v37  ;;  %v814_v39 = vsel %vm813_vm15, %v1543_v27, %v1545_v38 }
 0x2c9   : >>> { %816 = vst [vmem:[%s794_s30] sm:$0x3] %v814_v39 }
 0x2ca   : >>> { %v830_v40 = vld [vmem:[%s818_s21] ss:$0 sm:$0xff]  ;;  %v1549_v41 = vld [vmem:[%s818_s21 + $0x1] sm:$0x1] }
 0x2cb   : >>> { %1548 = vst [vmem:[%s817_s16 + $0x1] sm:$0x1] %v830_v40  ;;  %v838_v42 = vsel %vm813_vm15, %v1547_v34, %v1549_v41 }
 0x2cc   : >>> { %840 = vst [vmem:[%s818_s21] sm:$0x3] %v838_v42  ;;  %476 = sbr.rel (!%p474_p9) target bundleno = 272 (0x110), region = 470 }
 0x2cf   : >> { %v388_v43 = vld [vmem:[%s382_s26] sm:$0x3] (%p474_p9) }
 0x2d0   : >> { %v389_v45 = vsel (%p474_p9), %vm1411_vm2, %v388_v43, 0.0  ;;  %v424_v47 = vld [vmem:[%s418_s22] sm:$0x3] (%p474_p9) }
 0x2d1   : >> { %v390_v49 = vmul.f32 %v389_v45, %v389_v45  ;;  %v425_v51 = vsel %vm1411_vm2, %v424_v47, 0.0 }
 0x2d2   : >> { %v407_v44 = vld [vmem:[%s401_s11] sm:$0x3]  ;;  %v426_v53 = vmul.f32 %v425_v51, %v425_v51 }
 0x2d3   : >> { %v408_v46 = vsel %vm1411_vm2, %v407_v44, 0.0  ;;  %v441_v48 = vld [vmem:[%s435_s14] sm:$0x3]  ;;  %v394_v56 = vsel %vm393_vm7, 0.0, %v390_v49 }
 0x2d4   : >> { %v409_v50 = vmul.f32 %v408_v46, %v408_v46  ;;  %v442_v52 = vsel %vm1411_vm2, %v441_v48, 0.0 }
 0x2d5   : >> { %v443_v55 = vmul.f32 %v442_v52, %v442_v52 }
 0x2d6   : >> { %v411_v54 = vadd.f32 %v409_v50, %v390_v49  ;;  %v410_v57 = vadd.f32 %v409_v50, %v394_v56 }
 0x2d7   : >> { %v447_v60 = vsel %vm446_vm8, 0.0, %v443_v55 }
 0x2d8   : >> { %v428_v58 = vadd.f32 %v426_v53, %v411_v54  ;;  %v427_v59 = vadd.f32 %v426_v53, %v410_v57 }
 0x2da   : >> { %v449_v61 = vadd.f32 %v443_v55, %v428_v58  ;;  %v448_v62 = vadd.f32 %v447_v60, %v427_v59 }
 0x2dc   : >> { %450 = vadd.xlane.f32.xlu0 %v449_v61 }
 0x2e0   : >> { %458 = vadd.xlane.f32.xlu0 %v448_v62 }
 0x365   : >> { %v451_v63 = vpop.xlane.xlu0 %450 }
 0x366   : >> { %v452_v0 = vrot.slane %v451_v63, 4 }
 0x368   : >> { %v453_v1 = vadd.f32 %v452_v0, %v451_v63 }
 0x369   : >> { %v459_v2 = vpop.xlane.xlu0 %458 }
 0x36a   : >> { %v454_v3 = vrot.slane %v453_v1, 2  ;;  %v460_v4 = vrot.slane %v459_v2, 4 }
 0x36c   : >> { %v461_v5 = vadd.f32 %v460_v4, %v459_v2  ;;  %v455_v8 = vadd.f32 %v454_v3, %v453_v1 }
 0x36e   : >> { %v462_v9 = vrot.slane %v461_v5, 2  ;;  %v456_v11 = vrot.slane %v455_v8, 1 }
 0x370   : >> { %v463_v10 = vadd.f32 %v462_v9, %v461_v5  ;;  %v457_v14 = vadd.f32 %v456_v11, %v455_v8 }
 0x372   : >> { %v464_v12 = vrot.slane %v463_v10, 1 }
 0x374   : >> { %v465_v13 = vadd.f32 %v464_v12, %v463_v10 }
 0x376   : >> { %1576 = vpush %v465_v13 }
 0x377   : >> { %1578 = vpush %v457_v14 }
 0x3a7   : >> { %s1577_s20 = spop %1576 }
 0x3a8   : >> { %s1579_s15 = spop %1578 }
 0x3a9   : >> { %s468_s24 = smul.f32 1e-10, %s1579_s15 }
 0x3ab   : >> { %p469_p11 = scmp.le.f32.partialorder %s1577_s20, %s468_s24 }
 0x3ad   : >> { %p471_p12 = por %p470_p10, %p469_p11 }
 0x3af   : > { %919 = sbr.rel (!%p471_p12) target bundleno = 271 (0x10f), region = 481 }
 0x3b4 PF: > { %s924_s23 = smov [#allocation18]  ;;  %v928_v6 = vmov %v1781_v6  ;;  %v931_v7 = vmov %v1783_v7  ;;  %v968_v15 = vld [vmem:[#allocation10] sm:$0x3]  ;;  %v976_v16 = vld [vmem:[#allocation12] sm:$0x3]  ;;  %s2063_s17 = scalar_lea.vmem [#allocation11], %s1777_s28 }
 0x3b5   : > { %v948_v6 = vmov %v1781_v6  ;;  %v951_v7 = vmov %v1783_v7  ;;  %v932_v17 = vld [vmem:[%s924_s23] sm:$0x3]  ;;  %vm935_vm9 = vcmp.eq.s32.totalorder %v931_v7, %v928_v6  ;;  %971 = vst [vmem:[%s2063_s17] sm:$0x3] %v968_v15  ;;  %s2064_s27 = scalar_lea.vmem [#allocation13], %s1777_s28  ;;  %v984_v18 = vld [vmem:[#allocation14] sm:$0x3] }
 0x3b6   : > { %vm955_vm10 = vcmp.eq.s32.totalorder %v951_v7, %v948_v6  ;;  %979 = vst [vmem:[%s2064_s27] sm:$0x3] %v976_v16  ;;  %v992_v19 = vld [vmem:[#allocation16] sm:$0x3]  ;;  %v936_v20 = vsel %vm935_vm9, %v932_v17, 0.0  ;;  %s944_s29 = smov [#allocation21]  ;;  %s2065_s16 = scalar_lea.vmem [#allocation15], %s1777_s28 }
 0x3b7   : > { %987 = vst [vmem:[%s2065_s16] sm:$0x3] %v984_v18  ;;  %s2066_s30 = scalar_lea.vmem [#allocation17], %s1777_s28  ;;  %v937_v21 = vrot.slane %v936_v20, 4  ;;  %v952_v22 = vld [vmem:[%s944_s29] sm:$0x3]  ;;  %s920_s21 = sand.u32 7, %s1740_s12  }
 0x3b8   : > { %995 = vst [vmem:[%s2066_s30] sm:$0x3] %v992_v19  ;;  %v956_v23 = vsel %vm955_vm10, %v952_v22, 0.0  ;;  %s2067_s25 = scalar_lea.vmem [#allocation8], %s1779_s18  ;;  %s2068_s11 = scalar_lea.vmem [#allocation9], %s1779_s18 }
 0x3b9   : > { %v938_v24 = vadd.f32 %v937_v21, %v936_v20  ;;  %v957_v25 = vrot.slane %v956_v23, 4  ;;  %s921_s26 = scalar_lea.vmem %s2067_s25, %s920_s21 [#allocation8]  ;;  %s923_s22 = scalar_lea.vmem %s2068_s11, %s920_s21 [#allocation9] }
 0x3ba   : > { %s925_s26 = smov %s921_s26  ;;  %s945_s22 = smov %s923_s22 }
 0x3bb   : > { %v939_v6 = vrot.slane %v938_v24, 2  ;;  %v958_v7 = vadd.f32 %v957_v25, %v956_v23  ;;  %s1023_s14 = sshrl.u32 (%p1754_p3), %s1740_s12, 3  ;;  %s2069_s20 = scalar_lea.vmem (%p1754_p3), [#allocation8], %s1779_s18 }
 0x3bc   : > { %s1564_s15 = sshll.u32 (%p1754_p3), %s1023_s14, 3 }
 0x3bd   : > { %v940_v26 = vadd.f32 %v939_v6, %v938_v24  ;;  %v959_v27 = vrot.slane %v958_v7, 2  ;;  %s1025_s17 = scalar_lea.vmem (%p1754_p3), %s2054_s4, %s1564_s15 }
 0x3bf   : > { %v941_v28 = vrot.slane %v940_v26, 1  ;;  %v960_v29 = vadd.f32 %v959_v27, %v958_v7 }
 0x3c1   : > { %v942_v30 = vadd.f32 %v941_v28, %v940_v26  ;;  %v961_v31 = vrot.slane %v960_v29, 1  ;;  %1022 = sbr.rel (!%p1754_p3) target bundleno = 972 (0x3cc), region = 158 }
 0x3c3   : > { %943 = vst [vmem:[%s925_s26] sm:$0x1] %v942_v30  ;;  %v962_v32 = vadd.f32 %v961_v31, %v960_v29 }
 0x3c5   : > { %963 = vst [vmem:[%s945_s22] sm:$0x1] %v962_v32 }
 0x3ca   : > { %v1054_v33 = vld [vmem:[%s2069_s20] sm:$0xff] }
 0x3cb   : > { %1055 = vst [vmem:[%s1025_s17] sm:$0xff] %v1054_v33 }
 0x3cc PF: > { %1061 = sbr.rel (!%p1754_p3) target bundleno = 980 (0x3d4), region = 196  ;;  %s1062_s27 = sshrl.u32 (%p1754_p3), %s1740_s12, 3 }
 0x3cd   : > { %s2070_s29 = scalar_lea.vmem (%p1754_p3), [#allocation9], %s1779_s18  ;;  %s1565_s16 = sshll.u32 (%p1754_p3), %s1062_s27, 3 }
 0x3ce   : > { %s1064_s25 = scalar_lea.vmem (%p1754_p3), %s2055_s5, %s1565_s16 }
 0x3d2   : > { %v1093_v34 = vld [vmem:[%s2070_s29] sm:$0xff] }
 0x3d3   : > { %1094 = vst [vmem:[%s1064_s25] sm:$0xff] %v1093_v34 }
 0x3d4 PF: > { %s1566_s26 = sshll.u32 %s1740_s12, 1  ;;  %s2071_s19 = scalar_lea.vmem [#allocation11], %s1777_s28 }
 0x3d5   : > { %v1116_v35 = vld [vmem:[%s2071_s19] sm:$0x3]  ;;  %s2072_s11 = scalar_lea.vmem [#allocation13], %s1777_s28  ;;  %s1099_s14 = scalar_lea.vmem %s2056_s6, %s1566_s26 }
 0x3d6   : > { %v1151_v36 = vld [vmem:[%s2072_s11] sm:$0x3]  ;;  %s1134_s24 = scalar_lea.vmem %s2057_s7, %s1566_s26  ;;  %s2073_s23 = scalar_lea.vmem [#allocation15], %s1777_s28  ;;  %1117 = vst [vmem:[%s1099_s14] sm:$0x3] %v1116_v35 }
 0x3d7   : > { %v1186_v37 = vld [vmem:[%s2073_s23] sm:$0x3]  ;;  %s2074_s17 = scalar_lea.vmem [#allocation17], %s1777_s28  ;;  %1152 = vst [vmem:[%s1134_s24] sm:$0x3] %v1151_v36  ;;  %s1169_s29 = scalar_lea.vmem %s2058_s8, %s1566_s26 }
 0x3d8   : > { %v1221_v38 = vld [vmem:[%s2074_s17] sm:$0x3]  ;;  %s1204_s21 = scalar_lea.vmem %s2059_s9, %s1566_s26  ;;  %1187 = vst [vmem:[%s1169_s29] sm:$0x3] %v1186_v37 }
 0x3d9   : > { %1222 = vst [vmem:[%s1204_s21] sm:$0x3] %v1221_v38 }
 0x3da PF: > { %s2075_s25 = sld [smem:[#allocation31_spill]]  ;;  %p13_p13 = scmp.ge.s32.totalorder %s1743_s13, 10  }
 0x3db   : > { %s2076_s30 = smov %s1657_s10  ;;  %s2078_s11 = smov %s1743_s13 }
 0x3dc   :  { %15 = sbr.rel (!%p13_p13) target bundleno = 2 (0x2), region = 492 }
 0x3e0   : > { %s2077_s10 = smov %s2075_s25 }

// kernel: reverse
= control target key start
LH: loop header
LB: loop body
LE: loop exit
PB: predicated region body
PF: predicated region fallthrough
CT: control target
= control target key end

     0   :  { %v2_v0 = vlaneseq  ;;  %s99_s0 = inlined_call_operand.vmem [shape: f32[8,3], index: 0, kind: input, shape index: {}]   ;;  %s100_s1 = inlined_call_operand.vmem [shape: f32[8,3], index: 1, kind: output, shape index: {}]  }
   0x1   :  { %v33_v2 = vld [vmem:[%s99_s0] sm:$0xff] }
   0x2   :  { %v3_v1 = vsub.s32 2, %v2_v0 }
   0x4   :  { %4 = vset.pattern.permute.xlu0 %v3_v1 }
   0x5   :  { %39 = vperm.xlu0 %4, %v33_v2  }
  0x80   :  { %v40_v3 = vpop.permute.xlu0 %39 }
  0x81   :  { %71 = vst [vmem:[%s100_s1] sm:$0xff] %v40_v3 }

// kernel: custom-call.16
= control target key start
LH: loop header
LB: loop body
LE: loop exit
PB: predicated region body
PF: predicated region fallthrough
CT: control target
= control target key end

     0   :  { %s656_s9 = smov 0   ;;  %s658_s10 = smov 0   ;;  %s802_s0 = inlined_call_operand.vmem [shape: f32[8,3,3], index: 0, kind: input, shape index: {}]   ;;  %s803_s1 = inlined_call_operand.vmem [shape: f32[8,3,3], index: 1, kind: output, shape index: {0}]   ;;  %s804_s2 = inlined_call_operand.vmem [shape: f32[8,3], index: 2, kind: output, shape index: {1}]  }
   0x1   :  { %s660_s11 = smov 0   ;;  %s662_s12 = smov 0  }
   0x2   :  { %s664_s13 = smov 0  }
   0x3 LB: > { %s28_s14 = sadd.s32 1, %s629_s12  ;;  %s511_s15 = sadd.s32 4294967295, %s633_s13   ;;  %s633_s13 = sphi %s664_s13, %s9_s13   ;;  %s629_s12 = sphi %s662_s12, %s811_s12   ;;  %s625_s11 = sphi %s660_s11, %s810_s11   ;;  %s621_s10 = sphi %s658_s10, %s809_s10   ;;  %s617_s9 = sphi %s656_s9, %s808_s9  }
   0x4   : > { %p30_p0 = scmp.ge.s32.totalorder %s28_s14, 8  ;;  %s33_s16 = ssub.s32 0, %s629_s12 }
   0x5   : > { %s513_s17 = smin.u32 %s629_s12, %s33_s16  ;;  %p57_p1 = scmp.ne.s32.totalorder %s621_s10, %s617_s9 }
   0x6   : > { %s813_s14 = smov (%p30_p0, %s28_s14), 0  ;;  %s35_s18 = sshrl.u32 %s513_s17, 3 }
   0x7   : > { %s39_s19 = ssub.s32 0, %s813_s14  ;;  %p58_p2 = scmp.eq.s32.totalorder %s511_s15, 7 }
   0x8   : > { %s514_s20 = smin.u32 %s39_s19, %s813_s14  ;;  %s47_s24 = sadd.s32 1, %s621_s10 }
   0x9   : > { %s41_s21 = sshrl.u32 %s514_s20, 3  ;;  %p691_p3 = por %p58_p2, %p57_p1 }
   0xa   : > { %s44_s23 = ssub.s32 %s35_s18, %s41_s21  ;;  %p516_p5 = scmp.ge.s32.totalorder %s633_s13, 8 }
   0xb   : > { %p45_p4 = scmp.eq.s32.totalorder %s44_s23, 0  ;;  %s82_s26 = sand.u32 (!%p516_p5), 1, %s633_s13  }
   0xc   : > { %80 = sbr.rel (%p516_p5) target bundleno = 19 (0x13), region = 16  ;;  %s518_s27 = sshll.u32 (!%p516_p5), %s629_s12, 2 }
   0xd   : > { %s697_s25 = scalar_select %p45_p4, %s621_s10, %s47_s24  }
   0xe   : > { %s517_s28 = sshll.u32 (!%p516_p5), %s82_s26, 2  ;;  %s88_s3 = scalar_lea.vmem (!%p516_p5), %s802_s0, %s518_s27 }
   0xf   : > { %s84_s4 = scalar_lea.vmem (!%p516_p5), [#allocation1], %s517_s28 }
  0x11   : > { %v105_v0 = vld [vmem:[%s88_s3] sm:$0xf] }
  0x12   : > { %106 = vst [vmem:[%s84_s4] sm:$0xf] %v105_v0 }
  0x13 PF: > { %p519_p6 = scmp.ge.s32.totalorder %s633_s13, 1  ;;  %p123_p7 = scmp.lt.s32.totalorder %s633_s13, 9 }
  0x15   : > { %p124_p8 = pnand %p519_p6, %p123_p7 }
  0x17   : > { %127 = sbr.rel (%p124_p8) target bundleno = 352 (0x160), region = 50 }
  0x1c   : > { %s134_s5 = sand.u32 1, %s511_s15   ;;  %s144_s6 = sand.u32 1, %s617_s9   ;;  %v639_v2 = vmov 0.0  }
  0x1d   : > { %s520_s7 = sshll.u32 %s134_s5, 2  ;;  %s708_s8 = sshll.u32 %s144_s6, 3 }
  0x1e   : > { %s136_s16 = scalar_lea.vmem [#allocation1], %s520_s7  ;;  %s158_s17 = sand.u32 7, %s625_s11  }
  0x1f   : > { %v150_v1 = vld [vmem:[%s136_s16] sm:$0xf]  ;;  %s146_s18 = scalar_lea.vmem [#allocation4], %s708_s8  ;;  %s717_s15 = scalar_lea.vmem [#allocation3], %s520_s7 }
  0x20   : > { %151 = vst [vmem:[#allocation0] sm:$0xf] %v150_v1  ;;  %s714_s19 = scalar_lea.vmem %s146_s18, %s158_s17 [#allocation4]  ;;  %s719_s9 = smov 0  }
  0x21   : > { %162 = vst [vmem:[%s714_s19] sm:$0x1] %v639_v2 }
  0x27   : > { %v160_v3 = vld [vmem:[#allocation0] sm:$0xff] }
  0x28   : > { %161 = vst [vmem:[#allocation2] sm:$0xff] %v160_v3 }
  0x29 LB: >> { %v170_v4 = vlaneseq  ;;  %v728_v6 = vstv %s637_s9  ;;  %s197_s20 = scalar_lea.vmem [#allocation2], %s637_s9  ;;  %s233_s21 = smov [#allocation2]  ;;  %v640_v60 = vmov 1.0   ;;  %v268_v61 = vld [vmem:[%s714_s19] ss:$0 sm:$0xff]  ;;  %s637_s9 = sphi %s719_s9, %s168_s9  }
  0x2a   : >> { %s255_s23 = scalar_lea.vmem [#allocation5], %s637_s9  ;;  %s271_s24 = smov [#allocation2] }
  0x2b   : >> { %v725_v5 = vshrl.u32 %v170_v4, 7  ;;  %v249_v49 = vand.u32 127, %v170_v4  ;;  %s272_s26 = smov [#allocation5] }
  0x2d   : >> { %vm174_vm0 = vcmp.gt.s32.totalorder %v725_v5, %v728_v6  ;;  %vm175_vm1 = vcmp.lt.s32.totalorder %v725_v5, 3  ;;  %v236_v5 = vmov %v725_v5  ;;  %vm743_vm12 = vcmp.eq.s32.totalorder %v249_v49, %v728_v6 }
  0x2e   : >> { %vm176_vm2 = vmand %vm174_vm0, %vm175_vm1  ;;  %vm240_vm9 = vcmp.gt.s32.totalorder %v236_v5, %v728_v6  ;;  %vm241_vm10 = vcmp.lt.s32.totalorder %v236_v5, 3  ;;  %v275_v5 = vmov %v725_v5  ;;  %vm301_vm15 = vcmp.gt.s32.totalorder %v249_v49, %v728_v6 }
  0x2f   : >> { %v169_v7 = vld [vmem:[#allocation2] sm:$0xff]  ;;  %v198_v16 = vld [vmem:[%s197_s20] ss:$0 sm:$0xff]  ;;  %vm242_vm11 = vmand %vm240_vm9, %vm241_vm10  ;;  %vm280_vm13 = vcmp.lt.s32.totalorder %v275_v5, 3  ;;  %v292_v5 = vmov %v725_v5 }
  0x30   : >> { %v177_v8 = vsel %vm176_vm2, %v169_v7, 0.0  ;;  %v199_v17 = vand.u32 2147483647, %v198_v16  ;;  %vm224_vm8 = vcmp.lt.f32.partialorder %v198_v16, 0.0  ;;  %v237_v46 = vld [vmem:[%s233_s21] sm:$0xff]  ;;  %vm309_vm14 = vcmp.ge.s32.totalorder %v292_v5, %v728_v6 }
  0x31   : >> { %v178_v9 = vmul.f32 %v177_v8, %v177_v8  ;;  %v243_v50 = vsel %vm242_vm11, %v237_v46, 0.0  ;;  %v278_v0 = vld [vmem:[%s271_s24] sm:$0xff]  ;;  %s288_s24 = smov %s271_s24  ;;  %vm310_vm0 = vmand %vm743_vm12, %vm309_vm14 }
  0x32   : >> { %v200_v22 = vmax.f32 %v199_v17, 0.0  ;;  %s313_s27 = scalar_lea.vmem %s288_s24, %s637_s9  ;;  %s168_s9 = sadd.s32 1, %s637_s9  }
  0x33   : >> { %v179_v10 = vrot.slane %v178_v9, 4  ;;  %p165_p9 = scmp.ge.s32.totalorder %s168_s9, 3  }
  0x34   : > { %s526_s28 = sshll.u32 (%p165_p9), %s625_s11, 2 }
  0x35   : >> { %v180_v11 = vadd.f32 %v179_v10, %v178_v9  ;;  %s340_s3 = scalar_lea.vmem (%p165_p9), %s803_s1, %s526_s28 }
  0x37   : >> { %v181_v12 = vrot.slane %v180_v11, 2 }
  0x39   : >> { %v182_v13 = vadd.f32 %v181_v12, %v180_v11 }
  0x3b   : >> { %v183_v14 = vrot.slane %v182_v13, 1 }
  0x3d   : >> { %v184_v15 = vadd.f32 %v183_v14, %v182_v13  ;;  %v299_v14 = vld [vmem:[%s288_s24] sm:$0xff] }
  0x3f   : >> { %581 = vrsqrt.f32 %v184_v15  ;;  %vm187_vm3 = vcmp.eq.f32.partialorder %v184_v15, inf  ;;  %v190_v19 = vand.u32 2147483648, %v184_v15  ;;  %vm189_vm4 = vcmp.eq.f32.partialorder %v184_v15, 0.0 }
  0x4c   : >> { %v582_v18 = vpop.eup %581 }
  0x4d   : >> { %v186_v20 = vmul.f32 %v582_v18, %v184_v15 }
  0x4f   : >> { %v188_v21 = vsel %vm187_vm3, %v184_v15, %v186_v20 }
  0x50   : >> { %v191_v23 = vsel %vm189_vm4, %v190_v19, %v188_v21 }
  0x51   : >> { %v201_v24 = vand.u32 2147483647, %v191_v23 }
  0x53   : >> { %v202_v25 = vmax.f32 %v200_v22, %v201_v24 }
  0x55   : >> { %583 = vrcp.f32 %v202_v25  ;;  %vm214_vm7 = vcmp.eq.f32.partialorder %v202_v25, 0.0 }
  0x62   : >> { %v584_v26 = vpop.eup %583 }
  0x63   : >> { %v204_v27 = vmul.f32 %v584_v26, %v199_v17  ;;  %v207_v28 = vmul.f32 0.0, %v584_v26  ;;  %v211_v29 = vmul.f32 %v584_v26, %v201_v24 }
  0x65   : >> { %v205_v30 = vmul.f32 %v204_v27, %v204_v27  ;;  %v208_v31 = vmul.f32 %v207_v28, %v207_v28  ;;  %v212_v32 = vmul.f32 %v211_v29, %v211_v29 }
  0x67   : >> { %v209_v33 = vadd.f32 %v208_v31, %v205_v30 }
  0x69   : >> { %v213_v34 = vadd.f32 %v212_v32, %v209_v33 }
  0x6b   : >> { %585 = vrsqrt.f32 %v213_v34  ;;  %vm217_vm5 = vcmp.eq.f32.partialorder %v213_v34, inf  ;;  %v220_v36 = vand.u32 2147483648, %v213_v34  ;;  %vm219_vm6 = vcmp.eq.f32.partialorder %v213_v34, 0.0 }
  0x78   : >> { %v586_v35 = vpop.eup %585 }
  0x79   : >> { %v216_v37 = vmul.f32 %v586_v35, %v213_v34 }
  0x7b   : >> { %v218_v38 = vsel %vm217_vm5, %v213_v34, %v216_v37 }
  0x7c   : >> { %v221_v39 = vsel %vm219_vm6, %v220_v36, %v218_v38 }
  0x7d   : >> { %v222_v40 = vmul.f32 %v221_v39, %v202_v25 }
  0x7f   : >> { %v223_v41 = vsel %vm214_vm7, 0.0, %v222_v40 }
  0x80   : >> { %v225_v42 = vxor.u32 2147483648, %v223_v41 }
  0x82   : >> { %v226_v43 = vsel %vm224_vm8, %v223_v41, %v225_v42 }
  0x83   : >> { %v736_v44 = vsel %vm189_vm4, %v198_v16, %v226_v43  ;;  %587 = vrcp.f32 %v226_v43  ;;  %v227_v47 = vsub.f32 %v226_v43, %v198_v16 }
  0x84   : >> { %v232_v45 = vsub.f32 %v198_v16, %v736_v44 }
  0x86   : >> { %589 = vrcp.f32 %v232_v45 }
  0x90   : >> { %v588_v48 = vpop.eup %587 }
  0x91   : >> { %v229_v51 = vmul.f32 %v588_v48, %v227_v47 }
  0x93   : >> { %v590_v52 = vpop.eup %589  ;;  %v231_v56 = vsel %vm189_vm4, 0.0, %v229_v51 }
  0x94   : >> { %v245_v53 = vmul.f32 %v590_v52, %v243_v50  ;;  %v261_v58 = vsel %vm743_vm12, %v231_v56, 0.0 }
  0x96   : >> { %v246_v55 = vsel %vm189_vm4, 0.0, %v245_v53 }
  0x97   : >> { %v251_v57 = vsel %vm743_vm12, %v246_v55, 0.0 }
  0x98   : >> { %252 = vadd.xlane.f32.xlu0 %v251_v57 }
  0x9c   : >> { %262 = vadd.xlane.f32.xlu0 %v261_v58 }
 0x121   : >> { %v253_v59 = vpop.xlane.xlu0 %252 }
 0x122   : >> { %254 = vst [vmem:[#allocation5] sm:$0xff] %v253_v59 }
 0x123   : >> { %256 = vst [vmem:[%s255_s23] sm:$0x1] %v640_v60 }
 0x125   : >> { %v263_v62 = vpop.xlane.xlu0 %262 }
 0x126   : >> { %v269_v63 = vsel %vm743_vm12, %v263_v62, %v268_v61 }
 0x127   : >> { %270 = vst [vmem:[%s714_s19] sm:$0x1] %v269_v63 }
 0x12a   : >> { %v277_v1 = vld [vmem:[%s272_s26] sm:$0xff]  ;;  %s289_s26 = smov %s272_s26 }
 0x12b   : >> { %v279_v2 = vmul.f32 %v278_v0, %v277_v1  ;;  %v297_v13 = vld [vmem:[%s289_s26] sm:$0xff] }
 0x12d   : >> { %v281_v3 = vsel %vm280_vm13, %v279_v2, 0.0 }
 0x12e   : >> { %v282_v4 = vrot.slane %v281_v3, 4 }
 0x130   : >> { %v283_v7 = vadd.f32 %v282_v4, %v281_v3 }
 0x132   : >> { %v284_v8 = vrot.slane %v283_v7, 2 }
 0x134   : >> { %v285_v9 = vadd.f32 %v284_v8, %v283_v7 }
 0x136   : >> { %v286_v10 = vrot.slane %v285_v9, 1 }
 0x138   : >> { %v287_v11 = vadd.f32 %v286_v10, %v285_v9 }
 0x13a   : >> { %v293_v12 = vmul.f32 %v287_v11, %v263_v62 }
 0x13c   : >> { %v298_v15 = vmul.f32 %v297_v13, %v293_v12 }
 0x13e   : >> { %v302_v16 = vsub.f32 %v299_v14, %v298_v15 }
 0x140   : >> { %v303_v17 = vsel %vm301_vm15, %v302_v16, %v299_v14 }
 0x141   : >> { %v311_v18 = vsel %vm310_vm0, %v297_v13, %v303_v17 }
 0x142   : >> { %312 = vst [vmem:[%s288_s24] sm:$0xff] %v311_v18 }
 0x147   : > { %167 = sbr.rel (!%p165_p9) target bundleno = 41 (0x29), region = 171 }
 0x149   : >> { %v314_v19 = vld [vmem:[%s313_s27] ss:$0 sm:$0xff] }
 0x14a   : >> { %v319_v20 = vsel %vm743_vm12, %v736_v44, %v314_v19 }
 0x14b   : >> { %320 = vst [vmem:[%s313_s27] sm:$0x1] %v319_v20 }
 0x14c   : > { %p377_p10 = scmp.lt.s32.totalorder (%p691_p3), %s625_s11, 0  ;;  %s378_s4 = ssub.s32 (%p691_p3), 0, %s625_s11  ;;  %v413_v21 = vld [vmem:[%s146_s18] sm:$0xff] (%p691_p3) }
 0x14d   : > { %s527_s5 = smin.u32 (%p691_p3), %s625_s11, %s378_s4 }
 0x14e   : > { %s380_s6 = sshrl.u32 (%p691_p3), %s527_s5, 3 }
 0x14f   : > { %s381_s7 = ssub.s32 (%p691_p3), 0, %s380_s6 }
 0x152   : > { %v325_v5 = vld [vmem:[#allocation2] sm:$0xf] }
 0x153   : > { %328 = vst [vmem:[%s717_s15] sm:$0xf] %v325_v5 }
 0x157   : > { %376 = sbr.rel (!%p691_p3) target bundleno = 352 (0x160), region = 91 }
 0x15a   : > { %v357_v6 = vld [vmem:[%s717_s15] sm:$0xf] }
 0x15b   : > { %358 = vst [vmem:[%s340_s3] sm:$0xf] %v357_v6 }
 0x15c   : > { %s815_s7 = smov (!%p377_p10, %s381_s7), %s380_s6 }
 0x15d   : > { %s528_s16 = sshll.u32 %s815_s7, 3 }
 0x15e   : > { %s384_s15 = scalar_lea.vmem %s804_s2, %s528_s16 }
 0x15f   : > { %414 = vst [vmem:[%s384_s15] sm:$0xff] %v413_v21 }
 0x160 PF: > { %s9_s13 = sadd.s32 1, %s633_s13   ;;  %s808_s9 = smov %s621_s10 }
 0x161   : > { %p6_p11 = scmp.ge.s32.totalorder %s9_s13, 10   ;;  %s809_s10 = smov %s697_s25 }
 0x162   : > { %s810_s11 = smov %s629_s12  ;;  %s811_s12 = smov %s813_s14 }
 0x163   :  { %8 = sbr.rel (!%p6_p11) target bundleno = 3 (0x3), region = 182 }

</bundles_post_ra>
